<compile_context>
chip_gen: v7x
topology: tpu7x:2x2x1
jax: 0.10.0
libtpu: 0.0.40
codegen_flags: <defaults>
</compile_context>

<pallas_src>
import functools
import math

import jax
import jax.numpy as jnp
from jax.experimental import pallas as pl
from jax.experimental.pallas import tpu as pltpu

# ---------------- model hyper-parameters (small, consistent with module) ----
VOCAB_SIZE = 100
NUM_HIDDENS = 32          # num_hiddens == key/query/value size
FFN_NUM_HIDDENS = 64
NUM_HEADS = 2
NUM_LAYERS = 2
MAX_LEN = 64
BATCH = 2
SEQ = 8
LN_EPS = 1e-5             # PyTorch LayerNorm default

# rows of the packed per-layer (H-wide) vector table
_BO, _B2, _G1, _BE1, _G2, _BE2 = range(6)
NUM_VECS = 6


def _layernorm(x, gamma, beta):
    mu = jnp.mean(x, axis=-1, keepdims=True)
    var = jnp.mean((x - mu) ** 2, axis=-1, keepdims=True)
    return (x - mu) * jax.lax.rsqrt(var + LN_EPS) * gamma + beta


def _bert_stack_kernel(num_heads, num_layers, batch, seq,
                       valid_ref,       # SMEM (B,) int32 (scalar prefetch)
                       x_ref,           # (B*S, H) f32
                       wqkv_ref,        # (L, H, 3H) bf16
                       bqkv_ref,        # (L, 1, 3H) f32
                       wo_ref,          # (L, H, H)  bf16
                       w1_ref,          # (L, H, F)  bf16
                       b1_ref,          # (L, 1, F)  f32
                       w2_ref,          # (L, F, H)  bf16
                       vec_ref,         # (L, 6, H)  f32  [bo,b2,g1,be1,g2,be2]
                       out_ref):        # (B*S, H) f32
    BS = batch * seq
    H = x_ref.shape[-1]
    hd = H // num_heads
    scale = 1.0 / math.sqrt(hd)

    # Block-diagonal (no cross-batch attention) + valid-length key mask.
    # Built once; reused by every layer and every head.
    row = jax.lax.broadcasted_iota(jnp.int32, (BS, BS), 0)
    col = jax.lax.broadcasted_iota(jnp.int32, (BS, BS), 1)
    keep = jnp.zeros((BS, BS), jnp.bool_)
    for b in range(batch):                      # static unroll over batch
        vlen = valid_ref[b]
        keep = keep | ((row >= b * seq) & (row < (b + 1) * seq)
                       & (col >= b * seq) & (col < b * seq + vlen))

    x = x_ref[...].astype(jnp.float32)          # (BS, H), stays resident

    for l in range(num_layers):                 # static unroll over layers
        wqkv = wqkv_ref[l]                      # (H, 3H) bf16
        bqkv = bqkv_ref[l]                      # (1, 3H) f32
        wo = wo_ref[l]                          # (H, H)  bf16
        w1 = w1_ref[l]                          # (H, F)  bf16
        b1 = b1_ref[l]                          # (1, F)  f32
        w2 = w2_ref[l]                          # (F, H)  bf16
        vecs = vec_ref[l]                       # (6, H)  f32
        bo, b2 = vecs[_BO:_BO + 1, :], vecs[_B2:_B2 + 1, :]
        g1, be1 = vecs[_G1:_G1 + 1, :], vecs[_BE1:_BE1 + 1, :]
        g2, be2 = vecs[_G2:_G2 + 1, :], vecs[_BE2:_BE2 + 1, :]

        # --- fused QKV projection: one MXU push, N = 3H ---
        qkv = jnp.dot(x.astype(jnp.bfloat16), wqkv,
                      preferred_element_type=jnp.float32) + bqkv
        q, k, v = qkv[:, :H], qkv[:, H:2 * H], qkv[:, 2 * H:]

        # --- masked multi-head attention, Wo folded into the head loop ---
        acc = None
        for h in range(num_heads):              # static unroll over heads
            qh = q[:, h * hd:(h + 1) * hd].astype(jnp.bfloat16)
            kh = k[:, h * hd:(h + 1) * hd].astype(jnp.bfloat16)
            vh = v[:, h * hd:(h + 1) * hd].astype(jnp.bfloat16)

            scores = jnp.dot(qh, kh.T, preferred_element_type=jnp.float32) * scale
            scores = jnp.where(keep, scores, -1e6)   # d2l masked_softmax mask
            m = jnp.max(scores, axis=-1, keepdims=True)
            e = jnp.exp(scores - m)
            attn = e * pl.reciprocal(jnp.sum(e, axis=-1, keepdims=True),
                                     approx=True)    # dropout = identity
            ctx = jnp.dot(attn.astype(jnp.bfloat16), vh,
                          preferred_element_type=jnp.float32)        # (BS, hd)
            part = jnp.dot(ctx.astype(jnp.bfloat16),
                           wo[h * hd:(h + 1) * hd, :],
                           preferred_element_type=jnp.float32)       # (BS, H)
            acc = part if acc is None else acc + part
        attn_out = acc + bo

        # --- AddNorm 1 (f32) ---
        y = _layernorm(x + attn_out, g1, be1)

        # --- position-wise FFN ---
        hmid = jnp.maximum(
            jnp.dot(y.astype(jnp.bfloat16), w1,
                    preferred_element_type=jnp.float32) + b1, 0.0)
        ffn_out = jnp.dot(hmid.astype(jnp.bfloat16), w2,
                          preferred_element_type=jnp.float32) + b2

        # --- AddNorm 2 (f32) ---
        x = _layernorm(y + ffn_out, g2, be2)

    out_ref[...] = x.astype(out_ref.dtype)


def encoder_stack(x_flat, valid_lens, enc, batch, seq):
    """Full encoder stack (all layers, whole batch) in one pallas_call."""
    BS, H = x_flat.shape
    L = enc["wqkv"].shape[0]
    F = enc["w1"].shape[-1]

    def full_spec(shape):
        nd = len(shape)
        return pl.BlockSpec(shape, lambda i, vl, _nd=nd: (0,) * _nd)

    in_specs = [
        full_spec((BS, H)),              # x
        full_spec((L, H, 3 * H)),        # fused Wqkv
        full_spec((L, 1, 3 * H)),        # fused bqkv
        full_spec((L, H, H)),            # Wo
        full_spec((L, H, F)),            # W1
        full_spec((L, 1, F)),            # b1
        full_spec((L, F, H)),            # W2
        full_spec((L, NUM_VECS, H)),     # packed bo,b2,ln1_g,ln1_b,ln2_g,ln2_b
    ]

    grid_spec = pltpu.PrefetchScalarGridSpec(
        num_scalar_prefetch=1,           # valid_lens -> SMEM
        grid=(1,),                       # single step: no per-step overhead
        in_specs=in_specs,
        out_specs=full_spec((BS, H)),
    )

    kernel = functools.partial(_bert_stack_kernel,
                               NUM_HEADS, L, batch, seq)
    f = pl.pallas_call(
        kernel,
        out_shape=jax.ShapeDtypeStruct((BS, H), jnp.float32),
        grid_spec=grid_spec,
        compiler_params=pltpu.CompilerParams(
            dimension_semantics=("arbitrary",)),
    )
    return f(valid_lens, x_flat,
             enc["wqkv"], enc["bqkv"], enc["wo"],
             enc["w1"], enc["b1"], enc["w2"], enc["vecs"])


def init_params(key):
    """Deterministic synthetic parameters, pre-packed for the fused kernel."""
    H, F, L = NUM_HIDDENS, FFN_NUM_HIDDENS, NUM_LAYERS
    keys = jax.random.split(key, 3 + 6 * L)
    ki = iter(keys)

    token_emb = jax.random.normal(next(ki), (VOCAB_SIZE, H), jnp.float32) * 0.02
    segment_emb = jax.random.normal(next(ki), (2, H), jnp.float32) * 0.02
    pos_emb = jax.random.normal(next(ki), (1, MAX_LEN, H), jnp.float32) * 0.02

    wqkv, wo, w1, w2 = [], [], [], []
    for _ in range(L):
        wq = jax.random.normal(next(ki), (H, H), jnp.float32) * 0.02
        wk = jax.random.normal(next(ki), (H, H), jnp.float32) * 0.02
        wv = jax.random.normal(next(ki), (H, H), jnp.float32) * 0.02
        wqkv.append(jnp.concatenate([wq, wk, wv], axis=1))       # (H, 3H)
        wo.append(jax.random.normal(next(ki), (H, H), jnp.float32) * 0.02)
        w1.append(jax.random.normal(next(ki), (H, F), jnp.float32) * 0.02)
        w2.append(jax.random.normal(next(ki), (F, H), jnp.float32) * 0.02)

    # packed per-layer H-wide vectors: [bo, b2, ln1_g, ln1_b, ln2_g, ln2_b]
    vecs = jnp.zeros((L, NUM_VECS, H), jnp.float32)
    vecs = vecs.at[:, _G1, :].set(1.0).at[:, _G2, :].set(1.0)

    enc = {
        # matmul weights stored bf16 (MXU operands); accumulation stays f32
        "wqkv": jnp.stack(wqkv).astype(jnp.bfloat16),
        "bqkv": jnp.zeros((L, 1, 3 * H), jnp.float32),
        "wo": jnp.stack(wo).astype(jnp.bfloat16),
        "w1": jnp.stack(w1).astype(jnp.bfloat16),
        "b1": jnp.zeros((L, 1, F), jnp.float32),
        "w2": jnp.stack(w2).astype(jnp.bfloat16),
        "vecs": vecs,
    }
    return {"token_emb": token_emb, "segment_emb": segment_emb,
            "pos_emb": pos_emb, "enc": enc}


def bert_encoder_forward(params, tokens, segments, valid_lens):
    # Embedding gathers + positional add: plain-JAX glue.
    x = params["token_emb"][tokens] + params["segment_emb"][segments]
    x = x + params["pos_emb"][:, :tokens.shape[1], :]
    B, S, H = x.shape
    out = encoder_stack(x.reshape(B * S, H), valid_lens, params["enc"], B, S)
    return out.reshape(B, S, H)


if __name__ == "__main__":
    key = jax.random.PRNGKey(0)
    kp, kt, ks = jax.random.split(key, 3)

    params = init_params(kp)
    tokens = jax.random.randint(kt, (BATCH, SEQ), 0, VOCAB_SIZE, dtype=jnp.int32)
    segments = jax.random.randint(ks, (BATCH, SEQ), 0, 2, dtype=jnp.int32)
    valid_lens = jnp.array([SEQ, 5], dtype=jnp.int32)

    out = bert_encoder_forward(params, tokens, segments, valid_lens)
    jax.block_until_ready(out)
    assert out.shape == (BATCH, SEQ, NUM_HIDDENS)
    print("KERNEL_OK")
</pallas_src>

<mosaic_0001>
module attributes {stable_mosaic.version = 11 : i64} {
  func.func @_bert_stack_kernel(%arg0: i32, %arg1: memref<2xi32, #tpu.memory_space<smem>>, %arg2: memref<16x32xf32, #tpu.memory_space<vmem>>, %arg3: memref<2x32x96xbf16, #tpu.memory_space<vmem>>, %arg4: memref<2x1x96xf32, #tpu.memory_space<vmem>>, %arg5: memref<2x32x32xbf16, #tpu.memory_space<vmem>>, %arg6: memref<2x32x64xbf16, #tpu.memory_space<vmem>>, %arg7: memref<2x1x64xf32, #tpu.memory_space<vmem>>, %arg8: memref<2x64x32xbf16, #tpu.memory_space<vmem>>, %arg9: memref<2x6x32xf32, #tpu.memory_space<vmem>>, %arg10: memref<16x32xf32, #tpu.memory_space<vmem>>) attributes {dimension_semantics = [#tpu.dimension_semantics<arbitrary>], iteration_bounds = array<i64: 1>, scalar_prefetch = 1 : i64, scratch_operands = 0 : i64, tpu.core_type = #tpu.core_type<tc>, window_params = [{pipeline_mode = #tpu.pipeline_mode<synchronous>, transform_indices = @transform_0, window_bounds = array<i64: 16, 32>}, {pipeline_mode = #tpu.pipeline_mode<synchronous>, transform_indices = @transform_1, window_bounds = array<i64: 2, 32, 96>}, {pipeline_mode = #tpu.pipeline_mode<synchronous>, transform_indices = @transform_2, window_bounds = array<i64: 2, 1, 96>}, {pipeline_mode = #tpu.pipeline_mode<synchronous>, transform_indices = @transform_3, window_bounds = array<i64: 2, 32, 32>}, {pipeline_mode = #tpu.pipeline_mode<synchronous>, transform_indices = @transform_4, window_bounds = array<i64: 2, 32, 64>}, {pipeline_mode = #tpu.pipeline_mode<synchronous>, transform_indices = @transform_5, window_bounds = array<i64: 2, 1, 64>}, {pipeline_mode = #tpu.pipeline_mode<synchronous>, transform_indices = @transform_6, window_bounds = array<i64: 2, 64, 32>}, {pipeline_mode = #tpu.pipeline_mode<synchronous>, transform_indices = @transform_7, window_bounds = array<i64: 2, 6, 32>}, {pipeline_mode = #tpu.pipeline_mode<synchronous>, transform_indices = @transform_8, window_bounds = array<i64: 16, 32>}]} {
    %0 = tpu.iota {dimensions = array<i32: 0>} : vector<16x16xi32>
    %1 = tpu.iota {dimensions = array<i32: 1>} : vector<16x16xi32>
    %false = arith.constant false
    %2 = vector.broadcast %false : i1 to vector<16x16xi1>
    %c0 = arith.constant 0 : index
    %3 = memref.load %arg1[%c0] : memref<2xi32, #tpu.memory_space<smem>>
    %c0_i32 = arith.constant 0 : i32
    %4 = vector.broadcast %c0_i32 : i32 to vector<16x16xi32>
    %5 = arith.cmpi sge, %0, %4 : vector<16x16xi32>
    %c8_i32 = arith.constant 8 : i32
    %6 = vector.broadcast %c8_i32 : i32 to vector<16x16xi32>
    %7 = arith.cmpi slt, %0, %6 : vector<16x16xi32>
    %8 = arith.andi %5, %7 : vector<16x16xi1>
    %c0_i32_0 = arith.constant 0 : i32
    %9 = vector.broadcast %c0_i32_0 : i32 to vector<16x16xi32>
    %10 = arith.cmpi sge, %1, %9 : vector<16x16xi32>
    %11 = arith.andi %8, %10 : vector<16x16xi1>
    %c0_i32_1 = arith.constant 0 : i32
    %12 = arith.addi %c0_i32_1, %3 : i32
    %13 = vector.broadcast %12 : i32 to vector<16x16xi32>
    %14 = arith.cmpi slt, %1, %13 : vector<16x16xi32>
    %15 = arith.andi %11, %14 : vector<16x16xi1>
    %16 = arith.ori %2, %15 : vector<16x16xi1>
    %c1 = arith.constant 1 : index
    %17 = memref.load %arg1[%c1] : memref<2xi32, #tpu.memory_space<smem>>
    %c8_i32_2 = arith.constant 8 : i32
    %18 = vector.broadcast %c8_i32_2 : i32 to vector<16x16xi32>
    %19 = arith.cmpi sge, %0, %18 : vector<16x16xi32>
    %c16_i32 = arith.constant 16 : i32
    %20 = vector.broadcast %c16_i32 : i32 to vector<16x16xi32>
    %21 = arith.cmpi slt, %0, %20 : vector<16x16xi32>
    %22 = arith.andi %19, %21 : vector<16x16xi1>
    %c8_i32_3 = arith.constant 8 : i32
    %23 = vector.broadcast %c8_i32_3 : i32 to vector<16x16xi32>
    %24 = arith.cmpi sge, %1, %23 : vector<16x16xi32>
    %25 = arith.andi %22, %24 : vector<16x16xi1>
    %c8_i32_4 = arith.constant 8 : i32
    %26 = arith.addi %c8_i32_4, %17 : i32
    %27 = vector.broadcast %26 : i32 to vector<16x16xi32>
    %28 = arith.cmpi slt, %1, %27 : vector<16x16xi32>
    %29 = arith.andi %25, %28 : vector<16x16xi1>
    %30 = arith.ori %16, %29 : vector<16x16xi1>
    %c0_5 = arith.constant 0 : index
    %c0_6 = arith.constant 0 : index
    %31 = vector.load %arg2[%c0_5, %c0_6] : memref<16x32xf32, #tpu.memory_space<vmem>>, vector<16x32xf32>
    %c0_7 = arith.constant 0 : index
    %c0_8 = arith.constant 0 : index
    %c0_9 = arith.constant 0 : index
    %32 = vector.load %arg3[%c0_7, %c0_8, %c0_9] : memref<2x32x96xbf16, #tpu.memory_space<vmem>>, vector<1x32x96xbf16>
    %33 = vector.shape_cast %32 : vector<1x32x96xbf16> to vector<32x96xbf16>
    %c0_10 = arith.constant 0 : index
    %c0_11 = arith.constant 0 : index
    %c0_12 = arith.constant 0 : index
    %34 = vector.load %arg4[%c0_10, %c0_11, %c0_12] : memref<2x1x96xf32, #tpu.memory_space<vmem>>, vector<1x1x96xf32>
    %35 = vector.shape_cast %34 : vector<1x1x96xf32> to vector<1x96xf32>
    %c0_13 = arith.constant 0 : index
    %c0_14 = arith.constant 0 : index
    %c0_15 = arith.constant 0 : index
    %36 = vector.load %arg5[%c0_13, %c0_14, %c0_15] : memref<2x32x32xbf16, #tpu.memory_space<vmem>>, vector<1x32x32xbf16>
    %37 = vector.shape_cast %36 : vector<1x32x32xbf16> to vector<32x32xbf16>
    %c0_16 = arith.constant 0 : index
    %c0_17 = arith.constant 0 : index
    %c0_18 = arith.constant 0 : index
    %38 = vector.load %arg6[%c0_16, %c0_17, %c0_18] : memref<2x32x64xbf16, #tpu.memory_space<vmem>>, vector<1x32x64xbf16>
    %39 = vector.shape_cast %38 : vector<1x32x64xbf16> to vector<32x64xbf16>
    %c0_19 = arith.constant 0 : index
    %c0_20 = arith.constant 0 : index
    %c0_21 = arith.constant 0 : index
    %40 = vector.load %arg7[%c0_19, %c0_20, %c0_21] : memref<2x1x64xf32, #tpu.memory_space<vmem>>, vector<1x1x64xf32>
    %41 = vector.shape_cast %40 : vector<1x1x64xf32> to vector<1x64xf32>
    %c0_22 = arith.constant 0 : index
    %c0_23 = arith.constant 0 : index
    %c0_24 = arith.constant 0 : index
    %42 = vector.load %arg8[%c0_22, %c0_23, %c0_24] : memref<2x64x32xbf16, #tpu.memory_space<vmem>>, vector<1x64x32xbf16>
    %43 = vector.shape_cast %42 : vector<1x64x32xbf16> to vector<64x32xbf16>
    %c0_25 = arith.constant 0 : index
    %c0_26 = arith.constant 0 : index
    %c0_27 = arith.constant 0 : index
    %44 = vector.load %arg9[%c0_25, %c0_26, %c0_27] : memref<2x6x32xf32, #tpu.memory_space<vmem>>, vector<1x6x32xf32>
    %45 = vector.shape_cast %44 : vector<1x6x32xf32> to vector<6x32xf32>
    %46 = vector.extract_strided_slice %45 {offsets = [0, 0], sizes = [1, 32], strides = [1, 1]} : vector<6x32xf32> to vector<1x32xf32>
    %47 = vector.extract_strided_slice %45 {offsets = [1, 0], sizes = [1, 32], strides = [1, 1]} : vector<6x32xf32> to vector<1x32xf32>
    %48 = vector.extract_strided_slice %45 {offsets = [2, 0], sizes = [1, 32], strides = [1, 1]} : vector<6x32xf32> to vector<1x32xf32>
    %49 = vector.extract_strided_slice %45 {offsets = [3, 0], sizes = [1, 32], strides = [1, 1]} : vector<6x32xf32> to vector<1x32xf32>
    %50 = vector.extract_strided_slice %45 {offsets = [4, 0], sizes = [1, 32], strides = [1, 1]} : vector<6x32xf32> to vector<1x32xf32>
    %51 = vector.extract_strided_slice %45 {offsets = [5, 0], sizes = [1, 32], strides = [1, 1]} : vector<6x32xf32> to vector<1x32xf32>
    %52 = arith.truncf %31 : vector<16x32xf32> to vector<16x32xbf16>
    %cst = arith.constant dense<0.000000e+00> : vector<16x96xf32>
    %53 = tpu.matmul %52, %33, %cst {dimension_numbers = #tpu.dot_dimension_numbers<[1], [0], [0], [1], [0, 0, 1, 1], [], []>} : vector<16x32xbf16>, vector<32x96xbf16>, vector<16x96xf32> -> vector<16x96xf32>
    %54 = vector.broadcast %35 : vector<1x96xf32> to vector<16x96xf32>
    %55 = arith.addf %53, %54 : vector<16x96xf32>
    %56 = vector.extract_strided_slice %55 {offsets = [0, 0], sizes = [16, 32], strides = [1, 1]} : vector<16x96xf32> to vector<16x32xf32>
    %57 = vector.extract_strided_slice %55 {offsets = [0, 32], sizes = [16, 32], strides = [1, 1]} : vector<16x96xf32> to vector<16x32xf32>
    %58 = vector.extract_strided_slice %55 {offsets = [0, 64], sizes = [16, 32], strides = [1, 1]} : vector<16x96xf32> to vector<16x32xf32>
    %59 = vector.extract_strided_slice %56 {offsets = [0, 0], sizes = [16, 16], strides = [1, 1]} : vector<16x32xf32> to vector<16x16xf32>
    %60 = arith.truncf %59 : vector<16x16xf32> to vector<16x16xbf16>
    %61 = vector.extract_strided_slice %57 {offsets = [0, 0], sizes = [16, 16], strides = [1, 1]} : vector<16x32xf32> to vector<16x16xf32>
    %62 = arith.truncf %61 : vector<16x16xf32> to vector<16x16xbf16>
    %63 = vector.extract_strided_slice %58 {offsets = [0, 0], sizes = [16, 16], strides = [1, 1]} : vector<16x32xf32> to vector<16x16xf32>
    %64 = arith.truncf %63 : vector<16x16xf32> to vector<16x16xbf16>
    %65 = tpu.transpose %62, [1, 0] : vector<16x16xbf16> -> vector<16x16xbf16>
    %cst_28 = arith.constant dense<0.000000e+00> : vector<16x16xf32>
    %66 = tpu.matmul %60, %65, %cst_28 {dimension_numbers = #tpu.dot_dimension_numbers<[1], [0], [0], [1], [0, 0, 1, 1], [], []>} : vector<16x16xbf16>, vector<16x16xbf16>, vector<16x16xf32> -> vector<16x16xf32>
    %cst_29 = arith.constant 2.500000e-01 : f32
    %67 = vector.broadcast %cst_29 : f32 to vector<16x16xf32>
    %68 = arith.mulf %66, %67 : vector<16x16xf32>
    %cst_30 = arith.constant -1.000000e+06 : f32
    %69 = vector.broadcast %cst_30 : f32 to vector<16x16xf32>
    %70 = arith.select %30, %68, %69 : vector<16x16xi1>, vector<16x16xf32>
    %cst_31 = arith.constant dense<0xFF800000> : vector<16xf32>
    %71 = vector.multi_reduction <maximumf>, %70, %cst_31 [1] : vector<16x16xf32> to vector<16xf32>
    %72 = vector.shape_cast %71 : vector<16xf32> to vector<16x1xf32>
    %73 = vector.broadcast %72 : vector<16x1xf32> to vector<16x16xf32>
    %74 = arith.subf %70, %73 : vector<16x16xf32>
    %75 = math.exp %74 : vector<16x16xf32>
    %cst_32 = arith.constant dense<0.000000e+00> : vector<16xf32>
    %76 = vector.multi_reduction <add>, %75, %cst_32 [1] : vector<16x16xf32> to vector<16xf32>
    %77 = vector.shape_cast %76 : vector<16xf32> to vector<16x1xf32>
    %78 = tpu.reciprocal %77 {approx = true} : vector<16x1xf32> -> vector<16x1xf32>
    %79 = vector.broadcast %78 : vector<16x1xf32> to vector<16x16xf32>
    %80 = arith.mulf %75, %79 : vector<16x16xf32>
    %81 = arith.truncf %80 : vector<16x16xf32> to vector<16x16xbf16>
    %cst_33 = arith.constant dense<0.000000e+00> : vector<16x16xf32>
    %82 = tpu.matmul %81, %64, %cst_33 {dimension_numbers = #tpu.dot_dimension_numbers<[1], [0], [0], [1], [0, 0, 1, 1], [], []>} : vector<16x16xbf16>, vector<16x16xbf16>, vector<16x16xf32> -> vector<16x16xf32>
    %83 = arith.truncf %82 : vector<16x16xf32> to vector<16x16xbf16>
    %84 = vector.extract_strided_slice %37 {offsets = [0, 0], sizes = [16, 32], strides = [1, 1]} : vector<32x32xbf16> to vector<16x32xbf16>
    %cst_34 = arith.constant dense<0.000000e+00> : vector<16x32xf32>
    %85 = tpu.matmul %83, %84, %cst_34 {dimension_numbers = #tpu.dot_dimension_numbers<[1], [0], [0], [1], [0, 0, 1, 1], [], []>} : vector<16x16xbf16>, vector<16x32xbf16>, vector<16x32xf32> -> vector<16x32xf32>
    %86 = vector.extract_strided_slice %56 {offsets = [0, 16], sizes = [16, 16], strides = [1, 1]} : vector<16x32xf32> to vector<16x16xf32>
    %87 = arith.truncf %86 : vector<16x16xf32> to vector<16x16xbf16>
    %88 = vector.extract_strided_slice %57 {offsets = [0, 16], sizes = [16, 16], strides = [1, 1]} : vector<16x32xf32> to vector<16x16xf32>
    %89 = arith.truncf %88 : vector<16x16xf32> to vector<16x16xbf16>
    %90 = vector.extract_strided_slice %58 {offsets = [0, 16], sizes = [16, 16], strides = [1, 1]} : vector<16x32xf32> to vector<16x16xf32>
    %91 = arith.truncf %90 : vector<16x16xf32> to vector<16x16xbf16>
    %92 = tpu.transpose %89, [1, 0] : vector<16x16xbf16> -> vector<16x16xbf16>
    %cst_35 = arith.constant dense<0.000000e+00> : vector<16x16xf32>
    %93 = tpu.matmul %87, %92, %cst_35 {dimension_numbers = #tpu.dot_dimension_numbers<[1], [0], [0], [1], [0, 0, 1, 1], [], []>} : vector<16x16xbf16>, vector<16x16xbf16>, vector<16x16xf32> -> vector<16x16xf32>
    %cst_36 = arith.constant 2.500000e-01 : f32
    %94 = vector.broadcast %cst_36 : f32 to vector<16x16xf32>
    %95 = arith.mulf %93, %94 : vector<16x16xf32>
    %cst_37 = arith.constant -1.000000e+06 : f32
    %96 = vector.broadcast %cst_37 : f32 to vector<16x16xf32>
    %97 = arith.select %30, %95, %96 : vector<16x16xi1>, vector<16x16xf32>
    %cst_38 = arith.constant dense<0xFF800000> : vector<16xf32>
    %98 = vector.multi_reduction <maximumf>, %97, %cst_38 [1] : vector<16x16xf32> to vector<16xf32>
    %99 = vector.shape_cast %98 : vector<16xf32> to vector<16x1xf32>
    %100 = vector.broadcast %99 : vector<16x1xf32> to vector<16x16xf32>
    %101 = arith.subf %97, %100 : vector<16x16xf32>
    %102 = math.exp %101 : vector<16x16xf32>
    %cst_39 = arith.constant dense<0.000000e+00> : vector<16xf32>
    %103 = vector.multi_reduction <add>, %102, %cst_39 [1] : vector<16x16xf32> to vector<16xf32>
    %104 = vector.shape_cast %103 : vector<16xf32> to vector<16x1xf32>
    %105 = tpu.reciprocal %104 {approx = true} : vector<16x1xf32> -> vector<16x1xf32>
    %106 = vector.broadcast %105 : vector<16x1xf32> to vector<16x16xf32>
    %107 = arith.mulf %102, %106 : vector<16x16xf32>
    %108 = arith.truncf %107 : vector<16x16xf32> to vector<16x16xbf16>
    %cst_40 = arith.constant dense<0.000000e+00> : vector<16x16xf32>
    %109 = tpu.matmul %108, %91, %cst_40 {dimension_numbers = #tpu.dot_dimension_numbers<[1], [0], [0], [1], [0, 0, 1, 1], [], []>} : vector<16x16xbf16>, vector<16x16xbf16>, vector<16x16xf32> -> vector<16x16xf32>
    %110 = arith.truncf %109 : vector<16x16xf32> to vector<16x16xbf16>
    %111 = vector.extract_strided_slice %37 {offsets = [16, 0], sizes = [16, 32], strides = [1, 1]} : vector<32x32xbf16> to vector<16x32xbf16>
    %cst_41 = arith.constant dense<0.000000e+00> : vector<16x32xf32>
    %112 = tpu.matmul %110, %111, %cst_41 {dimension_numbers = #tpu.dot_dimension_numbers<[1], [0], [0], [1], [0, 0, 1, 1], [], []>} : vector<16x16xbf16>, vector<16x32xbf16>, vector<16x32xf32> -> vector<16x32xf32>
    %113 = arith.addf %85, %112 : vector<16x32xf32>
    %114 = vector.broadcast %46 : vector<1x32xf32> to vector<16x32xf32>
    %115 = arith.addf %113, %114 : vector<16x32xf32>
    %116 = arith.addf %31, %115 : vector<16x32xf32>
    %cst_42 = arith.constant dense<0.000000e+00> : vector<16xf32>
    %117 = vector.multi_reduction <add>, %116, %cst_42 [1] : vector<16x32xf32> to vector<16xf32>
    %118 = vector.shape_cast %117 : vector<16xf32> to vector<16x1xf32>
    %cst_43 = arith.constant 3.200000e+01 : f32
    %119 = vector.broadcast %cst_43 : f32 to vector<16x1xf32>
    %120 = arith.divf %118, %119 : vector<16x1xf32>
    %121 = vector.broadcast %120 : vector<16x1xf32> to vector<16x32xf32>
    %122 = arith.subf %116, %121 : vector<16x32xf32>
    %123 = arith.mulf %122, %122 : vector<16x32xf32>
    %cst_44 = arith.constant dense<0.000000e+00> : vector<16xf32>
    %124 = vector.multi_reduction <add>, %123, %cst_44 [1] : vector<16x32xf32> to vector<16xf32>
    %125 = vector.shape_cast %124 : vector<16xf32> to vector<16x1xf32>
    %cst_45 = arith.constant 3.200000e+01 : f32
    %126 = vector.broadcast %cst_45 : f32 to vector<16x1xf32>
    %127 = arith.divf %125, %126 : vector<16x1xf32>
    %128 = vector.broadcast %120 : vector<16x1xf32> to vector<16x32xf32>
    %129 = arith.subf %116, %128 : vector<16x32xf32>
    %cst_46 = arith.constant 9.99999974E-6 : f32
    %130 = vector.broadcast %cst_46 : f32 to vector<16x1xf32>
    %131 = arith.addf %127, %130 : vector<16x1xf32>
    %132 = math.rsqrt %131 : vector<16x1xf32>
    %133 = vector.broadcast %132 : vector<16x1xf32> to vector<16x32xf32>
    %134 = arith.mulf %129, %133 : vector<16x32xf32>
    %135 = vector.broadcast %48 : vector<1x32xf32> to vector<16x32xf32>
    %136 = arith.mulf %134, %135 : vector<16x32xf32>
    %137 = vector.broadcast %49 : vector<1x32xf32> to vector<16x32xf32>
    %138 = arith.addf %136, %137 : vector<16x32xf32>
    %139 = arith.truncf %138 : vector<16x32xf32> to vector<16x32xbf16>
    %cst_47 = arith.constant dense<0.000000e+00> : vector<16x64xf32>
    %140 = tpu.matmul %139, %39, %cst_47 {dimension_numbers = #tpu.dot_dimension_numbers<[1], [0], [0], [1], [0, 0, 1, 1], [], []>} : vector<16x32xbf16>, vector<32x64xbf16>, vector<16x64xf32> -> vector<16x64xf32>
    %141 = vector.broadcast %41 : vector<1x64xf32> to vector<16x64xf32>
    %142 = arith.addf %140, %141 : vector<16x64xf32>
    %cst_48 = arith.constant 0.000000e+00 : f32
    %143 = vector.broadcast %cst_48 : f32 to vector<16x64xf32>
    %144 = arith.maximumf %142, %143 : vector<16x64xf32>
    %145 = arith.truncf %144 : vector<16x64xf32> to vector<16x64xbf16>
    %cst_49 = arith.constant dense<0.000000e+00> : vector<16x32xf32>
    %146 = tpu.matmul %145, %43, %cst_49 {dimension_numbers = #tpu.dot_dimension_numbers<[1], [0], [0], [1], [0, 0, 1, 1], [], []>} : vector<16x64xbf16>, vector<64x32xbf16>, vector<16x32xf32> -> vector<16x32xf32>
    %147 = vector.broadcast %47 : vector<1x32xf32> to vector<16x32xf32>
    %148 = arith.addf %146, %147 : vector<16x32xf32>
    %149 = arith.addf %138, %148 : vector<16x32xf32>
    %cst_50 = arith.constant dense<0.000000e+00> : vector<16xf32>
    %150 = vector.multi_reduction <add>, %149, %cst_50 [1] : vector<16x32xf32> to vector<16xf32>
    %151 = vector.shape_cast %150 : vector<16xf32> to vector<16x1xf32>
    %cst_51 = arith.constant 3.200000e+01 : f32
    %152 = vector.broadcast %cst_51 : f32 to vector<16x1xf32>
    %153 = arith.divf %151, %152 : vector<16x1xf32>
    %154 = vector.broadcast %153 : vector<16x1xf32> to vector<16x32xf32>
    %155 = arith.subf %149, %154 : vector<16x32xf32>
    %156 = arith.mulf %155, %155 : vector<16x32xf32>
    %cst_52 = arith.constant dense<0.000000e+00> : vector<16xf32>
    %157 = vector.multi_reduction <add>, %156, %cst_52 [1] : vector<16x32xf32> to vector<16xf32>
    %158 = vector.shape_cast %157 : vector<16xf32> to vector<16x1xf32>
    %cst_53 = arith.constant 3.200000e+01 : f32
    %159 = vector.broadcast %cst_53 : f32 to vector<16x1xf32>
    %160 = arith.divf %158, %159 : vector<16x1xf32>
    %161 = vector.broadcast %153 : vector<16x1xf32> to vector<16x32xf32>
    %162 = arith.subf %149, %161 : vector<16x32xf32>
    %cst_54 = arith.constant 9.99999974E-6 : f32
    %163 = vector.broadcast %cst_54 : f32 to vector<16x1xf32>
    %164 = arith.addf %160, %163 : vector<16x1xf32>
    %165 = math.rsqrt %164 : vector<16x1xf32>
    %166 = vector.broadcast %165 : vector<16x1xf32> to vector<16x32xf32>
    %167 = arith.mulf %162, %166 : vector<16x32xf32>
    %168 = vector.broadcast %50 : vector<1x32xf32> to vector<16x32xf32>
    %169 = arith.mulf %167, %168 : vector<16x32xf32>
    %170 = vector.broadcast %51 : vector<1x32xf32> to vector<16x32xf32>
    %171 = arith.addf %169, %170 : vector<16x32xf32>
    %c1_55 = arith.constant 1 : index
    %c0_56 = arith.constant 0 : index
    %c0_57 = arith.constant 0 : index
    %172 = vector.load %arg3[%c1_55, %c0_56, %c0_57] : memref<2x32x96xbf16, #tpu.memory_space<vmem>>, vector<1x32x96xbf16>
    %173 = vector.shape_cast %172 : vector<1x32x96xbf16> to vector<32x96xbf16>
    %c1_58 = arith.constant 1 : index
    %c0_59 = arith.constant 0 : index
    %c0_60 = arith.constant 0 : index
    %174 = vector.load %arg4[%c1_58, %c0_59, %c0_60] : memref<2x1x96xf32, #tpu.memory_space<vmem>>, vector<1x1x96xf32>
    %175 = vector.shape_cast %174 : vector<1x1x96xf32> to vector<1x96xf32>
    %c1_61 = arith.constant 1 : index
    %c0_62 = arith.constant 0 : index
    %c0_63 = arith.constant 0 : index
    %176 = vector.load %arg5[%c1_61, %c0_62, %c0_63] : memref<2x32x32xbf16, #tpu.memory_space<vmem>>, vector<1x32x32xbf16>
    %177 = vector.shape_cast %176 : vector<1x32x32xbf16> to vector<32x32xbf16>
    %c1_64 = arith.constant 1 : index
    %c0_65 = arith.constant 0 : index
    %c0_66 = arith.constant 0 : index
    %178 = vector.load %arg6[%c1_64, %c0_65, %c0_66] : memref<2x32x64xbf16, #tpu.memory_space<vmem>>, vector<1x32x64xbf16>
    %179 = vector.shape_cast %178 : vector<1x32x64xbf16> to vector<32x64xbf16>
    %c1_67 = arith.constant 1 : index
    %c0_68 = arith.constant 0 : index
    %c0_69 = arith.constant 0 : index
    %180 = vector.load %arg7[%c1_67, %c0_68, %c0_69] : memref<2x1x64xf32, #tpu.memory_space<vmem>>, vector<1x1x64xf32>
    %181 = vector.shape_cast %180 : vector<1x1x64xf32> to vector<1x64xf32>
    %c1_70 = arith.constant 1 : index
    %c0_71 = arith.constant 0 : index
    %c0_72 = arith.constant 0 : index
    %182 = vector.load %arg8[%c1_70, %c0_71, %c0_72] : memref<2x64x32xbf16, #tpu.memory_space<vmem>>, vector<1x64x32xbf16>
    %183 = vector.shape_cast %182 : vector<1x64x32xbf16> to vector<64x32xbf16>
    %c1_73 = arith.constant 1 : index
    %c0_74 = arith.constant 0 : index
    %c0_75 = arith.constant 0 : index
    %184 = vector.load %arg9[%c1_73, %c0_74, %c0_75] : memref<2x6x32xf32, #tpu.memory_space<vmem>>, vector<1x6x32xf32>
    %185 = vector.shape_cast %184 : vector<1x6x32xf32> to vector<6x32xf32>
    %186 = vector.extract_strided_slice %185 {offsets = [0, 0], sizes = [1, 32], strides = [1, 1]} : vector<6x32xf32> to vector<1x32xf32>
    %187 = vector.extract_strided_slice %185 {offsets = [1, 0], sizes = [1, 32], strides = [1, 1]} : vector<6x32xf32> to vector<1x32xf32>
    %188 = vector.extract_strided_slice %185 {offsets = [2, 0], sizes = [1, 32], strides = [1, 1]} : vector<6x32xf32> to vector<1x32xf32>
    %189 = vector.extract_strided_slice %185 {offsets = [3, 0], sizes = [1, 32], strides = [1, 1]} : vector<6x32xf32> to vector<1x32xf32>
    %190 = vector.extract_strided_slice %185 {offsets = [4, 0], sizes = [1, 32], strides = [1, 1]} : vector<6x32xf32> to vector<1x32xf32>
    %191 = vector.extract_strided_slice %185 {offsets = [5, 0], sizes = [1, 32], strides = [1, 1]} : vector<6x32xf32> to vector<1x32xf32>
    %192 = arith.truncf %171 : vector<16x32xf32> to vector<16x32xbf16>
    %cst_76 = arith.constant dense<0.000000e+00> : vector<16x96xf32>
    %193 = tpu.matmul %192, %173, %cst_76 {dimension_numbers = #tpu.dot_dimension_numbers<[1], [0], [0], [1], [0, 0, 1, 1], [], []>} : vector<16x32xbf16>, vector<32x96xbf16>, vector<16x96xf32> -> vector<16x96xf32>
    %194 = vector.broadcast %175 : vector<1x96xf32> to vector<16x96xf32>
    %195 = arith.addf %193, %194 : vector<16x96xf32>
    %196 = vector.extract_strided_slice %195 {offsets = [0, 0], sizes = [16, 32], strides = [1, 1]} : vector<16x96xf32> to vector<16x32xf32>
    %197 = vector.extract_strided_slice %195 {offsets = [0, 32], sizes = [16, 32], strides = [1, 1]} : vector<16x96xf32> to vector<16x32xf32>
    %198 = vector.extract_strided_slice %195 {offsets = [0, 64], sizes = [16, 32], strides = [1, 1]} : vector<16x96xf32> to vector<16x32xf32>
    %199 = vector.extract_strided_slice %196 {offsets = [0, 0], sizes = [16, 16], strides = [1, 1]} : vector<16x32xf32> to vector<16x16xf32>
    %200 = arith.truncf %199 : vector<16x16xf32> to vector<16x16xbf16>
    %201 = vector.extract_strided_slice %197 {offsets = [0, 0], sizes = [16, 16], strides = [1, 1]} : vector<16x32xf32> to vector<16x16xf32>
    %202 = arith.truncf %201 : vector<16x16xf32> to vector<16x16xbf16>
    %203 = vector.extract_strided_slice %198 {offsets = [0, 0], sizes = [16, 16], strides = [1, 1]} : vector<16x32xf32> to vector<16x16xf32>
    %204 = arith.truncf %203 : vector<16x16xf32> to vector<16x16xbf16>
    %205 = tpu.transpose %202, [1, 0] : vector<16x16xbf16> -> vector<16x16xbf16>
    %cst_77 = arith.constant dense<0.000000e+00> : vector<16x16xf32>
    %206 = tpu.matmul %200, %205, %cst_77 {dimension_numbers = #tpu.dot_dimension_numbers<[1], [0], [0], [1], [0, 0, 1, 1], [], []>} : vector<16x16xbf16>, vector<16x16xbf16>, vector<16x16xf32> -> vector<16x16xf32>
    %cst_78 = arith.constant 2.500000e-01 : f32
    %207 = vector.broadcast %cst_78 : f32 to vector<16x16xf32>
    %208 = arith.mulf %206, %207 : vector<16x16xf32>
    %cst_79 = arith.constant -1.000000e+06 : f32
    %209 = vector.broadcast %cst_79 : f32 to vector<16x16xf32>
    %210 = arith.select %30, %208, %209 : vector<16x16xi1>, vector<16x16xf32>
    %cst_80 = arith.constant dense<0xFF800000> : vector<16xf32>
    %211 = vector.multi_reduction <maximumf>, %210, %cst_80 [1] : vector<16x16xf32> to vector<16xf32>
    %212 = vector.shape_cast %211 : vector<16xf32> to vector<16x1xf32>
    %213 = vector.broadcast %212 : vector<16x1xf32> to vector<16x16xf32>
    %214 = arith.subf %210, %213 : vector<16x16xf32>
    %215 = math.exp %214 : vector<16x16xf32>
    %cst_81 = arith.constant dense<0.000000e+00> : vector<16xf32>
    %216 = vector.multi_reduction <add>, %215, %cst_81 [1] : vector<16x16xf32> to vector<16xf32>
    %217 = vector.shape_cast %216 : vector<16xf32> to vector<16x1xf32>
    %218 = tpu.reciprocal %217 {approx = true} : vector<16x1xf32> -> vector<16x1xf32>
    %219 = vector.broadcast %218 : vector<16x1xf32> to vector<16x16xf32>
    %220 = arith.mulf %215, %219 : vector<16x16xf32>
    %221 = arith.truncf %220 : vector<16x16xf32> to vector<16x16xbf16>
    %cst_82 = arith.constant dense<0.000000e+00> : vector<16x16xf32>
    %222 = tpu.matmul %221, %204, %cst_82 {dimension_numbers = #tpu.dot_dimension_numbers<[1], [0], [0], [1], [0, 0, 1, 1], [], []>} : vector<16x16xbf16>, vector<16x16xbf16>, vector<16x16xf32> -> vector<16x16xf32>
    %223 = arith.truncf %222 : vector<16x16xf32> to vector<16x16xbf16>
    %224 = vector.extract_strided_slice %177 {offsets = [0, 0], sizes = [16, 32], strides = [1, 1]} : vector<32x32xbf16> to vector<16x32xbf16>
    %cst_83 = arith.constant dense<0.000000e+00> : vector<16x32xf32>
    %225 = tpu.matmul %223, %224, %cst_83 {dimension_numbers = #tpu.dot_dimension_numbers<[1], [0], [0], [1], [0, 0, 1, 1], [], []>} : vector<16x16xbf16>, vector<16x32xbf16>, vector<16x32xf32> -> vector<16x32xf32>
    %226 = vector.extract_strided_slice %196 {offsets = [0, 16], sizes = [16, 16], strides = [1, 1]} : vector<16x32xf32> to vector<16x16xf32>
    %227 = arith.truncf %226 : vector<16x16xf32> to vector<16x16xbf16>
    %228 = vector.extract_strided_slice %197 {offsets = [0, 16], sizes = [16, 16], strides = [1, 1]} : vector<16x32xf32> to vector<16x16xf32>
    %229 = arith.truncf %228 : vector<16x16xf32> to vector<16x16xbf16>
    %230 = vector.extract_strided_slice %198 {offsets = [0, 16], sizes = [16, 16], strides = [1, 1]} : vector<16x32xf32> to vector<16x16xf32>
    %231 = arith.truncf %230 : vector<16x16xf32> to vector<16x16xbf16>
    %232 = tpu.transpose %229, [1, 0] : vector<16x16xbf16> -> vector<16x16xbf16>
    %cst_84 = arith.constant dense<0.000000e+00> : vector<16x16xf32>
    %233 = tpu.matmul %227, %232, %cst_84 {dimension_numbers = #tpu.dot_dimension_numbers<[1], [0], [0], [1], [0, 0, 1, 1], [], []>} : vector<16x16xbf16>, vector<16x16xbf16>, vector<16x16xf32> -> vector<16x16xf32>
    %cst_85 = arith.constant 2.500000e-01 : f32
    %234 = vector.broadcast %cst_85 : f32 to vector<16x16xf32>
    %235 = arith.mulf %233, %234 : vector<16x16xf32>
    %cst_86 = arith.constant -1.000000e+06 : f32
    %236 = vector.broadcast %cst_86 : f32 to vector<16x16xf32>
    %237 = arith.select %30, %235, %236 : vector<16x16xi1>, vector<16x16xf32>
    %cst_87 = arith.constant dense<0xFF800000> : vector<16xf32>
    %238 = vector.multi_reduction <maximumf>, %237, %cst_87 [1] : vector<16x16xf32> to vector<16xf32>
    %239 = vector.shape_cast %238 : vector<16xf32> to vector<16x1xf32>
    %240 = vector.broadcast %239 : vector<16x1xf32> to vector<16x16xf32>
    %241 = arith.subf %237, %240 : vector<16x16xf32>
    %242 = math.exp %241 : vector<16x16xf32>
    %cst_88 = arith.constant dense<0.000000e+00> : vector<16xf32>
    %243 = vector.multi_reduction <add>, %242, %cst_88 [1] : vector<16x16xf32> to vector<16xf32>
    %244 = vector.shape_cast %243 : vector<16xf32> to vector<16x1xf32>
    %245 = tpu.reciprocal %244 {approx = true} : vector<16x1xf32> -> vector<16x1xf32>
    %246 = vector.broadcast %245 : vector<16x1xf32> to vector<16x16xf32>
    %247 = arith.mulf %242, %246 : vector<16x16xf32>
    %248 = arith.truncf %247 : vector<16x16xf32> to vector<16x16xbf16>
    %cst_89 = arith.constant dense<0.000000e+00> : vector<16x16xf32>
    %249 = tpu.matmul %248, %231, %cst_89 {dimension_numbers = #tpu.dot_dimension_numbers<[1], [0], [0], [1], [0, 0, 1, 1], [], []>} : vector<16x16xbf16>, vector<16x16xbf16>, vector<16x16xf32> -> vector<16x16xf32>
    %250 = arith.truncf %249 : vector<16x16xf32> to vector<16x16xbf16>
    %251 = vector.extract_strided_slice %177 {offsets = [16, 0], sizes = [16, 32], strides = [1, 1]} : vector<32x32xbf16> to vector<16x32xbf16>
    %cst_90 = arith.constant dense<0.000000e+00> : vector<16x32xf32>
    %252 = tpu.matmul %250, %251, %cst_90 {dimension_numbers = #tpu.dot_dimension_numbers<[1], [0], [0], [1], [0, 0, 1, 1], [], []>} : vector<16x16xbf16>, vector<16x32xbf16>, vector<16x32xf32> -> vector<16x32xf32>
    %253 = arith.addf %225, %252 : vector<16x32xf32>
    %254 = vector.broadcast %186 : vector<1x32xf32> to vector<16x32xf32>
    %255 = arith.addf %253, %254 : vector<16x32xf32>
    %256 = arith.addf %171, %255 : vector<16x32xf32>
    %cst_91 = arith.constant dense<0.000000e+00> : vector<16xf32>
    %257 = vector.multi_reduction <add>, %256, %cst_91 [1] : vector<16x32xf32> to vector<16xf32>
    %258 = vector.shape_cast %257 : vector<16xf32> to vector<16x1xf32>
    %cst_92 = arith.constant 3.200000e+01 : f32
    %259 = vector.broadcast %cst_92 : f32 to vector<16x1xf32>
    %260 = arith.divf %258, %259 : vector<16x1xf32>
    %261 = vector.broadcast %260 : vector<16x1xf32> to vector<16x32xf32>
    %262 = arith.subf %256, %261 : vector<16x32xf32>
    %263 = arith.mulf %262, %262 : vector<16x32xf32>
    %cst_93 = arith.constant dense<0.000000e+00> : vector<16xf32>
    %264 = vector.multi_reduction <add>, %263, %cst_93 [1] : vector<16x32xf32> to vector<16xf32>
    %265 = vector.shape_cast %264 : vector<16xf32> to vector<16x1xf32>
    %cst_94 = arith.constant 3.200000e+01 : f32
    %266 = vector.broadcast %cst_94 : f32 to vector<16x1xf32>
    %267 = arith.divf %265, %266 : vector<16x1xf32>
    %268 = vector.broadcast %260 : vector<16x1xf32> to vector<16x32xf32>
    %269 = arith.subf %256, %268 : vector<16x32xf32>
    %cst_95 = arith.constant 9.99999974E-6 : f32
    %270 = vector.broadcast %cst_95 : f32 to vector<16x1xf32>
    %271 = arith.addf %267, %270 : vector<16x1xf32>
    %272 = math.rsqrt %271 : vector<16x1xf32>
    %273 = vector.broadcast %272 : vector<16x1xf32> to vector<16x32xf32>
    %274 = arith.mulf %269, %273 : vector<16x32xf32>
    %275 = vector.broadcast %188 : vector<1x32xf32> to vector<16x32xf32>
    %276 = arith.mulf %274, %275 : vector<16x32xf32>
    %277 = vector.broadcast %189 : vector<1x32xf32> to vector<16x32xf32>
    %278 = arith.addf %276, %277 : vector<16x32xf32>
    %279 = arith.truncf %278 : vector<16x32xf32> to vector<16x32xbf16>
    %cst_96 = arith.constant dense<0.000000e+00> : vector<16x64xf32>
    %280 = tpu.matmul %279, %179, %cst_96 {dimension_numbers = #tpu.dot_dimension_numbers<[1], [0], [0], [1], [0, 0, 1, 1], [], []>} : vector<16x32xbf16>, vector<32x64xbf16>, vector<16x64xf32> -> vector<16x64xf32>
    %281 = vector.broadcast %181 : vector<1x64xf32> to vector<16x64xf32>
    %282 = arith.addf %280, %281 : vector<16x64xf32>
    %cst_97 = arith.constant 0.000000e+00 : f32
    %283 = vector.broadcast %cst_97 : f32 to vector<16x64xf32>
    %284 = arith.maximumf %282, %283 : vector<16x64xf32>
    %285 = arith.truncf %284 : vector<16x64xf32> to vector<16x64xbf16>
    %cst_98 = arith.constant dense<0.000000e+00> : vector<16x32xf32>
    %286 = tpu.matmul %285, %183, %cst_98 {dimension_numbers = #tpu.dot_dimension_numbers<[1], [0], [0], [1], [0, 0, 1, 1], [], []>} : vector<16x64xbf16>, vector<64x32xbf16>, vector<16x32xf32> -> vector<16x32xf32>
    %287 = vector.broadcast %187 : vector<1x32xf32> to vector<16x32xf32>
    %288 = arith.addf %286, %287 : vector<16x32xf32>
    %289 = arith.addf %278, %288 : vector<16x32xf32>
    %cst_99 = arith.constant dense<0.000000e+00> : vector<16xf32>
    %290 = vector.multi_reduction <add>, %289, %cst_99 [1] : vector<16x32xf32> to vector<16xf32>
    %291 = vector.shape_cast %290 : vector<16xf32> to vector<16x1xf32>
    %cst_100 = arith.constant 3.200000e+01 : f32
    %292 = vector.broadcast %cst_100 : f32 to vector<16x1xf32>
    %293 = arith.divf %291, %292 : vector<16x1xf32>
    %294 = vector.broadcast %293 : vector<16x1xf32> to vector<16x32xf32>
    %295 = arith.subf %289, %294 : vector<16x32xf32>
    %296 = arith.mulf %295, %295 : vector<16x32xf32>
    %cst_101 = arith.constant dense<0.000000e+00> : vector<16xf32>
    %297 = vector.multi_reduction <add>, %296, %cst_101 [1] : vector<16x32xf32> to vector<16xf32>
    %298 = vector.shape_cast %297 : vector<16xf32> to vector<16x1xf32>
    %cst_102 = arith.constant 3.200000e+01 : f32
    %299 = vector.broadcast %cst_102 : f32 to vector<16x1xf32>
    %300 = arith.divf %298, %299 : vector<16x1xf32>
    %301 = vector.broadcast %293 : vector<16x1xf32> to vector<16x32xf32>
    %302 = arith.subf %289, %301 : vector<16x32xf32>
    %cst_103 = arith.constant 9.99999974E-6 : f32
    %303 = vector.broadcast %cst_103 : f32 to vector<16x1xf32>
    %304 = arith.addf %300, %303 : vector<16x1xf32>
    %305 = math.rsqrt %304 : vector<16x1xf32>
    %306 = vector.broadcast %305 : vector<16x1xf32> to vector<16x32xf32>
    %307 = arith.mulf %302, %306 : vector<16x32xf32>
    %308 = vector.broadcast %190 : vector<1x32xf32> to vector<16x32xf32>
    %309 = arith.mulf %307, %308 : vector<16x32xf32>
    %310 = vector.broadcast %191 : vector<1x32xf32> to vector<16x32xf32>
    %311 = arith.addf %309, %310 : vector<16x32xf32>
    %c0_104 = arith.constant 0 : index
    %c0_105 = arith.constant 0 : index
    %312 = vector.load %arg10[%c0_104, %c0_105] : memref<16x32xf32, #tpu.memory_space<vmem>>, vector<16x32xf32>
    tpu.vector_store %arg10[%c0_104, %c0_105], %311 {strides = array<i32>} : memref<16x32xf32, #tpu.memory_space<vmem>>, vector<16x32xf32>,
    return
  }
  func.func @transform_0(%arg0: i32, %arg1: memref<2xi32, #tpu.memory_space<smem>>) -> (i32, i32) {
    %c0_i32 = arith.constant 0 : i32
    %c0_i32_0 = arith.constant 0 : i32
    %c0_i32_1 = arith.constant 0 : i32
    return %c0_i32, %c0_i32_0 : i32, i32
  }
  func.func @transform_1(%arg0: i32, %arg1: memref<2xi32, #tpu.memory_space<smem>>) -> (i32, i32, i32) {
    %c0_i32 = arith.constant 0 : i32
    %c0_i32_0 = arith.constant 0 : i32
    %c0_i32_1 = arith.constant 0 : i32
    %c0_i32_2 = arith.constant 0 : i32
    return %c0_i32, %c0_i32_0, %c0_i32_1 : i32, i32, i32
  }
  func.func @transform_2(%arg0: i32, %arg1: memref<2xi32, #tpu.memory_space<smem>>) -> (i32, i32, i32) {
    %c0_i32 = arith.constant 0 : i32
    %c0_i32_0 = arith.constant 0 : i32
    %c0_i32_1 = arith.constant 0 : i32
    %c0_i32_2 = arith.constant 0 : i32
    return %c0_i32, %c0_i32_0, %c0_i32_1 : i32, i32, i32
  }
  func.func @transform_3(%arg0: i32, %arg1: memref<2xi32, #tpu.memory_space<smem>>) -> (i32, i32, i32) {
    %c0_i32 = arith.constant 0 : i32
    %c0_i32_0 = arith.constant 0 : i32
    %c0_i32_1 = arith.constant 0 : i32
    %c0_i32_2 = arith.constant 0 : i32
    return %c0_i32, %c0_i32_0, %c0_i32_1 : i32, i32, i32
  }
  func.func @transform_4(%arg0: i32, %arg1: memref<2xi32, #tpu.memory_space<smem>>) -> (i32, i32, i32) {
    %c0_i32 = arith.constant 0 : i32
    %c0_i32_0 = arith.constant 0 : i32
    %c0_i32_1 = arith.constant 0 : i32
    %c0_i32_2 = arith.constant 0 : i32
    return %c0_i32, %c0_i32_0, %c0_i32_1 : i32, i32, i32
  }
  func.func @transform_5(%arg0: i32, %arg1: memref<2xi32, #tpu.memory_space<smem>>) -> (i32, i32, i32) {
    %c0_i32 = arith.constant 0 : i32
    %c0_i32_0 = arith.constant 0 : i32
    %c0_i32_1 = arith.constant 0 : i32
    %c0_i32_2 = arith.constant 0 : i32
    return %c0_i32, %c0_i32_0, %c0_i32_1 : i32, i32, i32
  }
  func.func @transform_6(%arg0: i32, %arg1: memref<2xi32, #tpu.memory_space<smem>>) -> (i32, i32, i32) {
    %c0_i32 = arith.constant 0 : i32
    %c0_i32_0 = arith.constant 0 : i32
    %c0_i32_1 = arith.constant 0 : i32
    %c0_i32_2 = arith.constant 0 : i32
    return %c0_i32, %c0_i32_0, %c0_i32_1 : i32, i32, i32
  }
  func.func @transform_7(%arg0: i32, %arg1: memref<2xi32, #tpu.memory_space<smem>>) -> (i32, i32, i32) {
    %c0_i32 = arith.constant 0 : i32
    %c0_i32_0 = arith.constant 0 : i32
    %c0_i32_1 = arith.constant 0 : i32
    %c0_i32_2 = arith.constant 0 : i32
    return %c0_i32, %c0_i32_0, %c0_i32_1 : i32, i32, i32
  }
  func.func @transform_8(%arg0: i32, %arg1: memref<2xi32, #tpu.memory_space<smem>>) -> (i32, i32) {
    %c0_i32 = arith.constant 0 : i32
    %c0_i32_0 = arith.constant 0 : i32
    %c0_i32_1 = arith.constant 0 : i32
    return %c0_i32, %c0_i32_0 : i32, i32
  }
}

</mosaic_0001>

<bundles_post_ra>
// kernel: tpu_custom_call.1
= control target key start
LH: loop header
LB: loop body
LE: loop exit
PB: predicated region body
PF: predicated region fallthrough
CT: control target
= control target key end

     0   :  { %s2182_s0 = inlined_call_operand.vmem [shape: s32[2], index: 0, kind: input, shape index: {}]   ;;  %s2183_s1 = inlined_call_operand.vmem [shape: f32[16,32], index: 1, kind: input, shape index: {}]   ;;  %s2184_s2 = inlined_call_operand.vmem [shape: bf16[2,32,96], index: 2, kind: input, shape index: {}]   ;;  %s2185_s3 = inlined_call_operand.vmem [shape: f32[2,1,96], index: 3, kind: input, shape index: {}]   ;;  %s2186_s4 = inlined_call_operand.vmem [shape: bf16[2,32,32], index: 4, kind: input, shape index: {}]   ;;  %s2187_s5 = inlined_call_operand.vmem [shape: bf16[2,32,64], index: 5, kind: input, shape index: {}]   ;;  %s2188_s6 = inlined_call_operand.vmem [shape: f32[2,1,64], index: 6, kind: input, shape index: {}]   ;;  %s2189_s7 = inlined_call_operand.vmem [shape: bf16[2,64,32], index: 7, kind: input, shape index: {}]   ;;  %s2190_s8 = inlined_call_operand.vmem [shape: f32[2,6,32], index: 8, kind: input, shape index: {}]   ;;  %s2191_s9 = inlined_call_operand.hbm [shape: f32[16,32], index: 9, kind: output, shape index: {}]  }
   0x1   :  { %s14_s11 = sshll.u32 %s2182_s0, 4  ;;  %s15_s11 = int_to_ptr.vmem [resolvable:$true] %s14_s11 }
   0x2   :  { %s1748_s12 = scalar_lea.vmem %s15_s11, 16  ;;  %p1753_p1 = scmp.lt.s32.totalorder %s15_s11, %s15_s11 }
   0x3   :  { %p1749_p0 = scmp.ne.s32.totalorder %s15_s11, %s1748_s12  ;;  %p1754_p2 = scmp.lt.s32.totalorder %s1748_s12, %s1748_s12 }
   0x5   :  { %p1755_p3 = por %p1754_p2, %p1753_p1 }
   0x7   :  { %p1756_p4 = pnand %p1755_p3, %p1749_p0 }
   0x9   :  { %1759 = shalt.err (!%p1756_p4)  }
   0xa   :  { %s1786_s13 = smov [#allocation3]  }
   0xb   :  { %17 = dma.vmem_to_smem %s15_s11, 16, %s1786_s13, [#allocation2] }
   0xc   :  { %1782 = dma.done.wait [#allocation2], 16 }
   0xd   :  { %1783 = vsyncadd [#allocation2], 4294967280 }
   0xe   :  { %19 = sfence }
   0xf   :  { %v1680_v0 = vld [vmem:[%s2184_s2] sm:$0xff]   ;;  %v1787_v1 = vmov 0.0   ;;  %v1681_v2 = vld [vmem:[%s2184_s2 + $0x8] sm:$0xff]   ;;  %vm1788_vm0 = vmmov 0   ;;  %vm118_vm1 = vcmask 261120  }
  0x10   :  { %1541 = vmatprep.subr.bf16.mxu1 %v1787_v1  ;;  %1555 = vmatprep.subr.bf16.mxu0 %v1787_v1  ;;  %v1863_v3 = vld [vmem:[%s2183_s1] sm:$0xff]  ;;  %v1868_v4 = vld [vmem:[%s2183_s1 + $0x8] sm:$0xff] }
  0x11   :  { %1542 = vmatpush3.bf16.msra.mxu1 %v1680_v0  ;;  %1545 = vmatprep.mubr.msk.bf16.mxu1 %vm1788_vm0, %v1787_v1  ;;  %v99_v5 = vpack.c.bf16 %v1868_v4, %v1863_v3 }
  0x12   :  { %1543 = vmatprep.subr.bf16.mxu1 %v1787_v1  ;;  %1557 = vmatprep.mubr.msk.bf16.mxu0 %vm1788_vm0, %v1787_v1 }
  0x15   :  { %1544 = vmatpush3.bf16.msra.mxu1 %v1681_v2 }
  0x16   :  { %1549 = vmatprep.subr.bf16.mxu1 %v1787_v1 }
  0x18   :  { %1546 = vmatmul.mubr.msk.bf16.vlgmr.msra.gmra.mrb[0].mxu1 %vm118_vm1, %v99_v5 }
  0x19   :  { %1551 = vmatprep.mubr.msk.bf16.mxu1 %vm1788_vm0, %v1787_v1 }
  0x1a   :  { %20 = vsyncpa [#allocation5], 0  ;;  %v1430_v6 = vld [vmem:[%s2185_s3] ss:$0 sm:$0xff]  ;;  %s1789_s22 = smov 112   ;;  %s1790_s23 = smov 96   ;;  %v41_v19 = vlaneseq }
  0x1b   :  { %s1791_s24 = smov 80   ;;  %vm167_vm2 = vcmask 130048   ;;  %s1429_s25 = sld [smem:[#allocation3 + $0x1]]  ;;  %vm657_vm7 = vcmask 523264  }
  0x1c   :  { %s43_s26 = sld [smem:[#allocation3]]  ;;  %v42_v20 = vand.u32 127, %v41_v19  ;;  %s1792_s28 = smov 48  }
  0x1d   :  { %s1793_s29 = smov 64  }
  0x1e   :  { %vm64_vm3 = vcmp.ge.s32.totalorder %v42_v20, 8 }
  0x21   :  { %s67_s27 = sadd.s32 8, %s1429_s25 }
  0x22   :  { %v68_v21 = vstv %s67_s27  ;;  %v53_v22 = vstv %s43_s26 }
  0x23   :  { %vm69_vm4 = vcmp.lt.s32.totalorder %v42_v20, %v68_v21  ;;  %vm1902_vm5 = vcmp.lt.s32.totalorder %v42_v20, %v53_v22  ;;  %v1682_v21 = vld [vmem:[%s2186_s4] sm:$0xff]   ;;  %v1683_v22 = vld [vmem:[%s2186_s4 + $0x8] sm:$0xff]  }
  0x24   :  { %vm1906_vm6 = vmand %vm64_vm3, %vm69_vm4 }
  0xeb   :  { %v156_v7 = vpop.f32.mrb[0].mxu1 }
  0xec   :  { %v1547_v8 = vpop.f32.mrb[1].mxu1  ;;  %v157_v10 = vadd.f32 %v1430_v6, %v156_v7 }
  0xed   :  { %v159_v9 = vpop.f32.mrb[2].mxu1 }
  0xee   :  { %v160_v11 = vadd.f32 %v1430_v6, %v159_v9  ;;  %v1548_v12 = vpop.f32.mrb[3].mxu1 }
  0xf0   :  { %v1882_v13 = vpack.c.bf16 %v160_v11, %v157_v10 }
  0xf2   :  { %290 = vrot.lane.b32.xlu1 %v1882_v13, %s1789_s22  ;;  %165 = vrot.lane.b32.xlu0 %v1882_v13, %s1790_s23 }
  0xf6   :  { %292 = vrot.lane.b32.xlu0 %v1882_v13, %s1791_s24 }
 0x164   :  { %v166_v14 = vpop.permute.xlu0 %165  ;;  %v291_v18 = vpop.permute.xlu1 %290 }
 0x165   :  { %v172_v15 = vsel %vm167_vm2, %v166_v14, 0 }
 0x166   :  { %1550 = vmatpush3.bf16.xpose.msra.mxu1 %v172_v15 }
 0x167   :  { %1561 = vmatprep.subr.bf16.mxu1 %v1787_v1 }
 0x168   :  { %v293_v16 = vpop.permute.xlu0 %292 }
 0x169   :  { %v298_v17 = vsel %vm167_vm2, %v293_v16, 0 }
 0x16d   :  { %1552 = vmatmul.mubr.msk.bf16.vlgmr.msra.gmra.mrb[4].mxu1 %vm167_vm2, %v1882_v13 }
 0x16e   :  { %1562 = vmatpush3.bf16.xpose.msra.mxu1 %v298_v17  ;;  %1563 = vmatprep.mubr.msk.bf16.mxu1 %vm1788_vm0, %v1787_v1 }
 0x16f   :  { %1573 = vmatprep.subr.bf16.mxu1 %v1787_v1 }
 0x175   :  { %1564 = vmatmul.mubr.msk.bf16.vlgmr.msra.gmra.mrb[8].mxu1 %vm167_vm2, %v291_v18 }
 0x176   :  { %1575 = vmatprep.mubr.msk.bf16.mxu1 %vm1788_vm0, %v1787_v1  ;;  %1574 = vmatpush3.bf16.msra.mxu1 %v1683_v22 }
 0x177   :  { %1585 = vmatprep.subr.bf16.mxu1 %v1787_v1 }
 0x240   :  { %v208_v23 = vpop.f32.mrb[4].mxu1 }
 0x241   :  { %v215_v25 = vmul.f32 0.25, %v208_v23  ;;  %v1553_v26 = vpop.f32.mrb[5].mxu1 }
 0x242   :  { %v211_v27 = vpop.f32.mrb[6].mxu1 }
 0x243   :  { %v216_v29 = vmul.f32 0.25, %v211_v27  ;;  %v1554_v30 = vpop.f32.mrb[7].mxu1  ;;  %v217_v31 = vsel %vm1902_vm5, %v215_v25, -1000000.0 }
 0x244   :  { %v219_v32 = vsel %vm167_vm2, %v217_v31, -inf }
 0x245   :  { %220 = vmax.xlane.f32.xlu1 %v219_v32  ;;  %v218_v33 = vsel %vm1906_vm6, %v216_v29, -1000000.0 }
 0x246   :  { %v222_v34 = vsel %vm167_vm2, %v218_v33, -inf }
 0x247   :  { %223 = vmax.xlane.f32.xlu0 %v222_v34 }
 0x248   :  { %v334_v35 = vpop.f32.mrb[8].mxu1 }
 0x249   :  { %v341_v36 = vmul.f32 0.25, %v334_v35  ;;  %v1565_v37 = vpop.f32.mrb[9].mxu1  ;;  %v1953_v35 = vshrl.u32 %v41_v19, 7 }
 0x24a   :  { %v337_v38 = vpop.f32.mrb[10].mxu1 }
 0x24b   :  { %v342_v39 = vmul.f32 0.25, %v337_v38  ;;  %v1566_v40 = vpop.f32.mrb[11].mxu1  ;;  %v343_v41 = vsel %vm1902_vm5, %v341_v36, -1000000.0 }
 0x24c   :  { %v345_v42 = vsel %vm167_vm2, %v343_v41, -inf  ;;  %v518_v40 = vsub.s32 0, %v1953_v35 }
 0x24d   :  { %346 = vmax.xlane.f32.xlu0 %v345_v42  ;;  %v344_v43 = vsel %vm1906_vm6, %v342_v39, -1000000.0 }
 0x24e   :  { %v348_v44 = vsel %vm167_vm2, %v344_v43, -inf }
 0x24f   :  { %349 = vmax.xlane.f32.xlu1 %v348_v44 }
 0x2d2   :  { %v221_v45 = vpop.xlane.xlu1 %220 }
 0x2d3   :  { %v225_v46 = vsub.f32 %v217_v31, %v221_v45 }
 0x2d4   :  { %v224_v47 = vpop.xlane.xlu0 %223 }
 0x2d5   :  { %v227_v48 = vmul.f32 1.442695, %v225_v46  ;;  %v226_v49 = vsub.f32 %v218_v33, %v224_v47 }
 0x2d7   :  { %1700 = vpow2.f32 %v227_v48  ;;  %v229_v50 = vmul.f32 1.442695, %v226_v49 }
 0x2d9   :  { %1702 = vpow2.f32 %v229_v50 }
 0x2da   :  { %v347_v51 = vpop.xlane.xlu0 %346 }
 0x2db   :  { %v351_v52 = vsub.f32 %v343_v41, %v347_v51  ;;  %v1959_v41 = vld [vmem:[%s2190_s8] sm:$0x3f] }
 0x2dc   :  { %v350_v53 = vpop.xlane.xlu1 %349  ;;  %v519_v42 = vrot.slane %v1959_v41, %v518_v40 }
 0x2dd   :  { %v353_v54 = vmul.f32 1.442695, %v351_v52  ;;  %v352_v55 = vsub.f32 %v344_v43, %v350_v53 }
 0x2df   :  { %1704 = vpow2.f32 %v353_v54  ;;  %v355_v56 = vmul.f32 1.442695, %v352_v55 }
 0x2e1   :  { %v1701_v57 = vpop.eup %1700  ;;  %1706 = vpow2.f32 %v355_v56 }
 0x2e2   :  { %v231_v58 = vsel %vm167_vm2, %v1701_v57, 0.0 }
 0x2e3   :  { %v1703_v59 = vpop.eup %1702  ;;  %232 = vadd.xlane.f32.xlu0 %v231_v58 }
 0x2e4   :  { %v234_v60 = vsel %vm167_vm2, %v1703_v59, 0.0 }
 0x2e5   :  { %235 = vadd.xlane.f32.xlu1 %v234_v60 }
 0x2e9   :  { %v1705_v61 = vpop.eup %1704 }
 0x2ea   :  { %v357_v62 = vsel %vm167_vm2, %v1705_v61, 0.0 }
 0x2eb   :  { %v1707_v63 = vpop.eup %1706  ;;  %358 = vadd.xlane.f32.xlu0 %v357_v62 }
 0x2ec   :  { %v360_v0 = vsel %vm167_vm2, %v1707_v63, 0.0 }
 0x2ed   :  { %361 = vadd.xlane.f32.xlu1 %v360_v0  ;;  %v1686_v0 = vld [vmem:[%s2189_s7] sm:$0xff]  }
 0x2fe   :  { %368 = vrot.lane.b32.xlu1 %v1882_v13, %s1792_s28 }
 0x301   :  { %242 = vrot.lane.b32.xlu0 %v1882_v13, %s1793_s29 }
 0x370   :  { %v233_v2 = vpop.xlane.xlu0 %232 }
 0x371   :  { %1708 = vrcp.f32 %v233_v2  ;;  %v1687_v2 = vld [vmem:[%s2189_s7 + $0x8] sm:$0xff]  }
 0x372   :  { %v236_v5 = vpop.xlane.xlu1 %235 }
 0x373   :  { %1710 = vrcp.f32 %v236_v5 }
 0x378   :  { %v359_v6 = vpop.xlane.xlu0 %358 }
 0x379   :  { %1712 = vrcp.f32 %v359_v6 }
 0x37a   :  { %v362_v7 = vpop.xlane.xlu1 %361 }
 0x37b   :  { %v1709_v8 = vpop.eup %1708  ;;  %1714 = vrcp.f32 %v362_v7 }
 0x37c   :  { %v243_v9 = vpop.permute.xlu0 %242  ;;  %v239_v11 = vmul.f32 %v1709_v8, %v1701_v57 }
 0x37d   :  { %v1711_v10 = vpop.eup %1710  ;;  %1556 = vmatpush3.bf16.msra.mxu0 %v243_v9 }
 0x37e   :  { %1567 = vmatprep.subr.bf16.mxu0 %v1787_v1  ;;  %v240_v12 = vmul.f32 %v1711_v10, %v1703_v59  ;;  %v369_v15 = vpop.permute.xlu1 %368 }
 0x380   :  { %v241_v14 = vpack.c.bf16 %v240_v12, %v239_v11  ;;  %v553_v11 = vsub.s32 2, %v1953_v35 }
 0x382   :  { %1558 = vmatmul.mubr.msk.bf16.vlgmr.msra.gmra.mrb[0].mxu0 %vm167_vm2, %v241_v14  ;;  %v554_v12 = vrot.slane %v1959_v41, %v553_v11  ;;  %v559_v14 = vsub.s32 3, %v1953_v35 }
 0x383   :  { %v1713_v13 = vpop.eup %1712  ;;  %1568 = vmatpush3.bf16.msra.mxu0 %v369_v15  ;;  %1569 = vmatprep.mubr.msk.bf16.mxu0 %vm1788_vm0, %v1787_v1 }
 0x384   :  { %1579 = vmatprep.subr.bf16.mxu0 %v1787_v1  ;;  %v365_v17 = vmul.f32 %v1713_v13, %v1705_v61 }
 0x385   :  { %v1715_v16 = vpop.eup %1714 }
 0x386   :  { %v366_v18 = vmul.f32 %v1715_v16, %v1707_v63  ;;  %v1685_v63 = vld [vmem:[%s2187_s5 + $0x8] sm:$0xff]  }
 0x388   :  { %v367_v20 = vpack.c.bf16 %v366_v18, %v365_v17 }
 0x38a   :  { %1570 = vmatmul.mubr.msk.bf16.vlgmr.msra.gmra.mrb[4].mxu0 %vm167_vm2, %v367_v20  ;;  %v560_v20 = vrot.slane %v1959_v41, %v559_v14 }
 0x38b   :  { %1581 = vmatprep.mubr.msk.bf16.mxu0 %vm1788_vm0, %v1787_v1  ;;  %1580 = vmatpush3.bf16.msra.mxu0 %v1682_v21 }
 0x38c   :  { %1593 = vmatprep.subr.bf16.mxu0 %v1787_v1 }
 0x455   :  { %v282_v23 = vpop.f32.mrb[0].mxu0 }
 0x456   :  { %v1559_v25 = vpop.f32.mrb[1].mxu0 }
 0x457   :  { %v285_v26 = vpop.f32.mrb[2].mxu0 }
 0x458   :  { %v289_v27 = vpack.c.bf16 %v285_v26, %v282_v23  ;;  %v1560_v29 = vpop.f32.mrb[3].mxu0  ;;  %v1688_v26 = vld [vmem:[%s2189_s7 + $0x10] sm:$0xff]  }
 0x459   :  { %v1442_v29 = vld [vmem:[%s2188_s6] ss:$0 sm:$0xff] }
 0x45a   :  { %1582 = vmatmul.mubr.msk.bf16.vlgmr.msra.gmra.mrb[8].mxu0 %vm167_vm2, %v289_v27  ;;  %v1689_v27 = vld [vmem:[%s2189_s7 + $0x18] sm:$0xff]  }
 0x45b   :  { %1601 = vmatprep.mubr.msk.bf16.mxu0 %vm1788_vm0, %v1787_v1  ;;  %1594 = vmatpush3.bf16.msra.mxu0 %v1686_v0 }
 0x45c   :  { %1595 = vmatprep.subr.bf16.mxu0 %v1787_v1 }
 0x45d   :  { %v408_v30 = vpop.f32.mrb[4].mxu0 }
 0x45e   :  { %v1571_v31 = vpop.f32.mrb[5].mxu0 }
 0x45f   :  { %v411_v32 = vpop.f32.mrb[6].mxu0  ;;  %1596 = vmatpush3.bf16.msra.mxu0 %v1687_v2 }
 0x460   :  { %v415_v33 = vpack.c.bf16 %v411_v32, %v408_v30  ;;  %v1572_v34 = vpop.f32.mrb[7].mxu0  ;;  %1597 = vmatprep.subr.bf16.mxu0 %v1787_v1 }
 0x462   :  { %1576 = vmatmul.mubr.msk.bf16.vlgmr.msra.gmra.mrb[12].mxu1 %vm167_vm2, %v415_v33 }
 0x463   :  { %1589 = vmatprep.mubr.msk.bf16.mxu1 %vm1788_vm0, %v1787_v1  ;;  %1598 = vmatpush3.bf16.msra.mxu0 %v1688_v26 }
 0x464   :  { %1599 = vmatprep.subr.bf16.mxu0 %v1787_v1 }
 0x467   :  { %1600 = vmatpush3.bf16.msra.mxu0 %v1689_v27 }
 0x468   :  { %1619 = vmatprep.subr.bf16.mxu0 %v1787_v1 }
 0x52d   :  { %v509_v36 = vpop.f32.mrb[8].mxu0 }
 0x52e   :  { %v1583_v37 = vpop.f32.mrb[9].mxu0 }
 0x52f   :  { %v512_v38 = vpop.f32.mrb[10].mxu0 }
 0x530   :  { %v1584_v39 = vpop.f32.mrb[11].mxu0 }
 0x535   :  { %v459_v43 = vpop.f32.mrb[12].mxu1 }
 0x536   :  { %v510_v44 = vadd.f32 %v509_v36, %v459_v43  ;;  %v1577_v45 = vpop.f32.mrb[13].mxu1 }
 0x537   :  { %v462_v19 = vpop.f32.mrb[14].mxu1 }
 0x538   :  { %v520_v46 = vadd.f32 %v519_v42, %v510_v44  ;;  %v513_v47 = vadd.f32 %v512_v38, %v462_v19  ;;  %v1578_v48 = vpop.f32.mrb[15].mxu1 }
 0x53a   :  { %v521_v49 = vadd.f32 %v519_v42, %v513_v47  ;;  %v522_v50 = vadd.f32 %v520_v46, %v1863_v3  ;;  %v631_v42 = vsub.s32 1, %v1953_v35 }
 0x53c   :  { %v524_v51 = vsel %vm118_vm1, %v522_v50, 0.0  ;;  %v523_v52 = vadd.f32 %v521_v49, %v1868_v4  ;;  %v1684_v4 = vld [vmem:[%s2187_s5] sm:$0xff]   ;;  %v632_v43 = vrot.slane %v1959_v41, %v631_v42 }
 0x53d   :  { %525 = vadd.xlane.f32.xlu1 %v524_v51  ;;  %1586 = vmatpush3.bf16.msra.mxu1 %v1684_v4  ;;  %v1691_v4 = vld [vmem:[%s2184_s2 + $0x18] sm:$0xff]  }
 0x53e   :  { %v527_v53 = vsel %vm118_vm1, %v523_v52, 0.0  ;;  %1587 = vmatprep.subr.bf16.mxu1 %v1787_v1 }
 0x53f   :  { %528 = vadd.xlane.f32.xlu0 %v527_v53 }
 0x541   :  { %1588 = vmatpush3.bf16.msra.mxu1 %v1685_v63 }
 0x542   :  { %1605 = vmatprep.subr.bf16.mxu1 %v1787_v1 }
 0x5ca   :  { %v526_v54 = vpop.xlane.xlu1 %525 }
 0x5cb   :  { %v531_v55 = vmul.f32 0.03125, %v526_v54 }
 0x5cc   :  { %v529_v56 = vpop.xlane.xlu0 %528 }
 0x5cd   :  { %v533_v57 = vsub.f32 %v522_v50, %v531_v55  ;;  %v532_v58 = vmul.f32 0.03125, %v529_v56 }
 0x5cf   :  { %v534_v59 = vsub.f32 %v523_v52, %v532_v58  ;;  %v535_v60 = vmul.f32 %v533_v57, %v533_v57 }
 0x5d1   :  { %v537_v61 = vsel %vm118_vm1, %v535_v60, 0.0  ;;  %v536_v62 = vmul.f32 %v534_v59, %v534_v59 }
 0x5d2   :  { %538 = vadd.xlane.f32.xlu0 %v537_v61 }
 0x5d3   :  { %v540_v3 = vsel %vm118_vm1, %v536_v62, 0.0 }
 0x5d4   :  { %541 = vadd.xlane.f32.xlu1 %v540_v3  ;;  %v1690_v3 = vld [vmem:[%s2184_s2 + $0x10] sm:$0xff]  }
 0x65f   :  { %v539_v5 = vpop.xlane.xlu0 %538 }
 0x660   :  { %v543_v6 = vmul.f32 0.03125, %v539_v5 }
 0x661   :  { %v542_v7 = vpop.xlane.xlu1 %541 }
 0x662   :  { %v545_v8 = vadd.f32 1e-05, %v543_v6  ;;  %v544_v9 = vmul.f32 0.03125, %v542_v7 }
 0x664   :  { %1716 = vrsqrt.f32 %v545_v8  ;;  %v546_v10 = vadd.f32 1e-05, %v544_v9  ;;  %v732_v8 = vsub.s32 4, %v1953_v35 }
 0x666   :  { %1718 = vrsqrt.f32 %v546_v10  ;;  %v733_v9 = vrot.slane %v1959_v41, %v732_v8  ;;  %v738_v10 = vsub.s32 5, %v1953_v35 }
 0x66e   :  { %v1717_v15 = vpop.eup %1716 }
 0x66f   :  { %v549_v13 = vmul.f32 %v1717_v15, %v533_v57 }
 0x670   :  { %v1719_v16 = vpop.eup %1718 }
 0x671   :  { %v555_v17 = vmul.f32 %v554_v12, %v549_v13  ;;  %v550_v18 = vmul.f32 %v1719_v16, %v534_v59 }
 0x673   :  { %v556_v21 = vmul.f32 %v554_v12, %v550_v18  ;;  %v561_v22 = vadd.f32 %v560_v20, %v555_v17  ;;  %v739_v18 = vrot.slane %v1959_v41, %v738_v10 }
 0x675   :  { %v562_v23 = vadd.f32 %v560_v20, %v556_v21 }
 0x677   :  { %v563_v25 = vpack.c.bf16 %v562_v23, %v561_v22 }
 0x679   :  { %1590 = vmatmul.mubr.msk.bf16.vlgmr.msra.gmra.mrb[16].mxu1 %vm118_vm1, %v563_v25  ;;  %v1474_v25 = vld [vmem:[%s2185_s3 + $0x1] ss:$0 sm:$0xff] }
 0x67a   :  { %1609 = vmatprep.mubr.msk.bf16.mxu1 %vm1788_vm0, %v1787_v1  ;;  %1606 = vmatpush3.bf16.msra.mxu1 %v1690_v3 }
 0x67b   :  { %1607 = vmatprep.subr.bf16.mxu1 %v1787_v1 }
 0x67e   :  { %1608 = vmatpush3.bf16.msra.mxu1 %v1691_v4 }
 0x67f   :  { %1613 = vmatprep.subr.bf16.mxu1 %v1787_v1 }
 0x74c   :  { %v619_v30 = vpop.f32.mrb[16].mxu1 }
 0x74d   :  { %v620_v31 = vadd.f32 %v1442_v29, %v619_v30  ;;  %v1591_v32 = vpop.f32.mrb[17].mxu1 }
 0x74e   :  { %v622_v33 = vpop.f32.mrb[18].mxu1 }
 0x74f   :  { %v623_v34 = vadd.f32 %v1442_v29, %v622_v33  ;;  %v1592_v36 = vpop.f32.mrb[19].mxu1  ;;  %v626_v37 = vmax.f32 %v620_v31, 0.0 }
 0x751   :  { %v627_v38 = vmax.f32 %v623_v34, 0.0 }
 0x753   :  { %v628_v39 = vpack.c.bf16 %v627_v38, %v626_v37 }
 0x755   :  { %1602 = vmatmul.mubr.msk.bf16.vlgmr.msra.gmra.mrb[12].mxu0 %vm657_vm7, %v628_v39 }
 0x756   :  { %1621 = vmatprep.mubr.msk.bf16.mxu0 %vm1788_vm0, %v1787_v1 }
 0x828   :  { %v695_v44 = vpop.f32.mrb[12].mxu0 }
 0x829   :  { %v696_v45 = vadd.f32 %v695_v44, %v632_v43  ;;  %v1603_v19 = vpop.f32.mrb[13].mxu0 }
 0x82a   :  { %v698_v46 = vpop.f32.mrb[14].mxu0 }
 0x82b   :  { %v699_v47 = vadd.f32 %v698_v46, %v632_v43  ;;  %v1604_v48 = vpop.f32.mrb[15].mxu0  ;;  %v702_v49 = vadd.f32 %v696_v45, %v561_v22 }
 0x82d   :  { %v704_v50 = vsel %vm118_vm1, %v702_v49, 0.0  ;;  %v703_v51 = vadd.f32 %v699_v47, %v562_v23 }
 0x82e   :  { %705 = vadd.xlane.f32.xlu0 %v704_v50 }
 0x82f   :  { %v707_v52 = vsel %vm118_vm1, %v703_v51, 0.0 }
 0x830   :  { %708 = vadd.xlane.f32.xlu1 %v707_v52 }
 0x8bb   :  { %v706_v53 = vpop.xlane.xlu0 %705 }
 0x8bc   :  { %v710_v54 = vmul.f32 0.03125, %v706_v53 }
 0x8bd   :  { %v709_v55 = vpop.xlane.xlu1 %708 }
 0x8be   :  { %v712_v56 = vsub.f32 %v702_v49, %v710_v54  ;;  %v711_v57 = vmul.f32 0.03125, %v709_v55 }
 0x8c0   :  { %v713_v58 = vsub.f32 %v703_v51, %v711_v57  ;;  %v714_v59 = vmul.f32 %v712_v56, %v712_v56 }
 0x8c2   :  { %v716_v60 = vsel %vm118_vm1, %v714_v59, 0.0  ;;  %v715_v61 = vmul.f32 %v713_v58, %v713_v58 }
 0x8c3   :  { %717 = vadd.xlane.f32.xlu0 %v716_v60 }
 0x8c4   :  { %v719_v62 = vsel %vm118_vm1, %v715_v61, 0.0 }
 0x8c5   :  { %720 = vadd.xlane.f32.xlu1 %v719_v62 }
 0x950   :  { %v718_v63 = vpop.xlane.xlu0 %717 }
 0x951   :  { %v722_v0 = vmul.f32 0.03125, %v718_v63 }
 0x952   :  { %v721_v2 = vpop.xlane.xlu1 %720 }
 0x953   :  { %v724_v5 = vadd.f32 1e-05, %v722_v0  ;;  %v723_v6 = vmul.f32 0.03125, %v721_v2 }
 0x955   :  { %1720 = vrsqrt.f32 %v724_v5  ;;  %v725_v7 = vadd.f32 1e-05, %v723_v6 }
 0x957   :  { %1722 = vrsqrt.f32 %v725_v7 }
 0x95f   :  { %v1721_v12 = vpop.eup %1720 }
 0x960   :  { %v728_v15 = vmul.f32 %v1721_v12, %v712_v56 }
 0x961   :  { %v1723_v13 = vpop.eup %1722 }
 0x962   :  { %v734_v16 = vmul.f32 %v733_v9, %v728_v15  ;;  %v729_v17 = vmul.f32 %v1723_v13, %v713_v58 }
 0x964   :  { %v735_v20 = vmul.f32 %v733_v9, %v729_v17  ;;  %v2035_v21 = vadd.f32 %v739_v18, %v734_v16 }
 0x966   :  { %v2037_v22 = vadd.f32 %v739_v18, %v735_v20 }
 0x968   :  { %v772_v23 = vpack.c.bf16 %v2037_v22, %v2035_v21 }
 0x96a   :  { %1610 = vmatmul.mubr.msk.bf16.vlgmr.msra.gmra.mrb[20].mxu1 %vm118_vm1, %v772_v23 }
 0x96b   :  { %1615 = vmatprep.mubr.msk.bf16.mxu1 %vm1788_vm0, %v1787_v1 }
 0xa3d   :  { %v828_v26 = vpop.f32.mrb[20].mxu1 }
 0xa3e   :  { %v1611_v27 = vpop.f32.mrb[21].mxu1  ;;  %v829_v29 = vadd.f32 %v1474_v25, %v828_v26 }
 0xa3f   :  { %v831_v41 = vpop.f32.mrb[22].mxu1 }
 0xa40   :  { %v832_v30 = vadd.f32 %v1474_v25, %v831_v41  ;;  %v1612_v31 = vpop.f32.mrb[23].mxu1 }
 0xa42   :  { %v2047_v32 = vpack.c.bf16 %v832_v30, %v829_v29 }
 0xa44   :  { %963 = vrot.lane.b32.xlu1 %v2047_v32, %s1791_s24  ;;  %837 = vrot.lane.b32.xlu0 %v2047_v32, %s1790_s23 }
 0xa48   :  { %961 = vrot.lane.b32.xlu1 %v2047_v32, %s1789_s22 }
 0xab6   :  { %v838_v33 = vpop.permute.xlu0 %837  ;;  %v964_v36 = vpop.permute.xlu1 %963 }
 0xab7   :  { %v843_v34 = vsel %vm167_vm2, %v838_v33, 0  ;;  %v969_v37 = vsel %vm167_vm2, %v964_v36, 0 }
 0xab8   :  { %1614 = vmatpush3.bf16.xpose.msra.mxu1 %v843_v34 }
 0xab9   :  { %1625 = vmatprep.subr.bf16.mxu1 %v1787_v1 }
 0xaba   :  { %v962_v38 = vpop.permute.xlu1 %961 }
 0xabf   :  { %1616 = vmatmul.mubr.msk.bf16.vlgmr.msra.gmra.mrb[24].mxu1 %vm167_vm2, %v2047_v32 }
 0xac0   :  { %1626 = vmatpush3.bf16.xpose.msra.mxu1 %v969_v37  ;;  %1627 = vmatprep.mubr.msk.bf16.mxu1 %vm1788_vm0, %v1787_v1 }
 0xac1   :  { %1637 = vmatprep.subr.bf16.mxu1 %v1787_v1 }
 0xac7   :  { %1628 = vmatmul.mubr.msk.bf16.vlgmr.msra.gmra.mrb[28].mxu1 %vm167_vm2, %v962_v38 }
 0xac8   :  { %1639 = vmatprep.mubr.msk.bf16.mxu1 %vm1788_vm0, %v1787_v1 }
 0xb92   :  { %v879_v39 = vpop.f32.mrb[24].mxu1 }
 0xb93   :  { %v886_v43 = vmul.f32 0.25, %v879_v39  ;;  %v1617_v44 = vpop.f32.mrb[25].mxu1 }
 0xb94   :  { %v882_v45 = vpop.f32.mrb[26].mxu1  ;;  %v1692_v44 = vld [vmem:[%s2186_s4 + $0x10] sm:$0xff]  }
 0xb95   :  { %v887_v19 = vmul.f32 0.25, %v882_v45  ;;  %v1618_v46 = vpop.f32.mrb[27].mxu1  ;;  %v888_v47 = vsel %vm1902_vm5, %v886_v43, -1000000.0  ;;  %v1693_v45 = vld [vmem:[%s2186_s4 + $0x18] sm:$0xff]  }
 0xb96   :  { %v890_v48 = vsel %vm167_vm2, %v888_v47, -inf  ;;  %1638 = vmatpush3.bf16.msra.mxu1 %v1693_v45 }
 0xb97   :  { %891 = vmax.xlane.f32.xlu0 %v890_v48  ;;  %v889_v49 = vsel %vm1906_vm6, %v887_v19, -1000000.0  ;;  %1649 = vmatprep.subr.bf16.mxu1 %v1787_v1 }
 0xb98   :  { %v893_v50 = vsel %vm167_vm2, %v889_v49, -inf }
 0xb99   :  { %894 = vmax.xlane.f32.xlu1 %v893_v50 }
 0xb9a   :  { %v1005_v51 = vpop.f32.mrb[28].mxu1 }
 0xb9b   :  { %v1012_v52 = vmul.f32 0.25, %v1005_v51  ;;  %v1629_v53 = vpop.f32.mrb[29].mxu1 }
 0xb9c   :  { %v1008_v54 = vpop.f32.mrb[30].mxu1 }
 0xb9d   :  { %v1013_v55 = vmul.f32 0.25, %v1008_v54  ;;  %v1630_v56 = vpop.f32.mrb[31].mxu1  ;;  %v1014_v57 = vsel %vm1902_vm5, %v1012_v52, -1000000.0 }
 0xb9e   :  { %v1016_v58 = vsel %vm167_vm2, %v1014_v57, -inf }
 0xb9f   :  { %1017 = vmax.xlane.f32.xlu0 %v1016_v58  ;;  %v1015_v59 = vsel %vm1906_vm6, %v1013_v55, -1000000.0 }
 0xba0   :  { %v1019_v60 = vsel %vm167_vm2, %v1015_v59, -inf }
 0xba3   :  { %1020 = vmax.xlane.f32.xlu0 %v1019_v60 }
 0xc24   :  { %v892_v61 = vpop.xlane.xlu0 %891 }
 0xc25   :  { %v896_v62 = vsub.f32 %v888_v47, %v892_v61 }
 0xc26   :  { %v895_v3 = vpop.xlane.xlu1 %894 }
 0xc27   :  { %v898_v4 = vmul.f32 1.442695, %v896_v62  ;;  %v897_v63 = vsub.f32 %v889_v49, %v895_v3 }
 0xc29   :  { %1724 = vpow2.f32 %v898_v4  ;;  %v900_v0 = vmul.f32 1.442695, %v897_v63 }
 0xc2b   :  { %1726 = vpow2.f32 %v900_v0 }
 0xc2c   :  { %v1018_v2 = vpop.xlane.xlu0 %1017 }
 0xc2d   :  { %v1022_v24 = vsub.f32 %v1014_v57, %v1018_v2 }
 0xc2f   :  { %v1024_v5 = vmul.f32 1.442695, %v1022_v24 }
 0xc30   :  { %v1021_v6 = vpop.xlane.xlu0 %1020 }
 0xc31   :  { %1728 = vpow2.f32 %v1024_v5  ;;  %v1023_v7 = vsub.f32 %v1015_v59, %v1021_v6  ;;  %v2111_v59 = vld [vmem:[%s2190_s8 + $0x8] sm:$0x3f] }
 0xc32   :  { %v1190_v60 = vrot.slane %v2111_v59, %v518_v40 }
 0xc33   :  { %v1725_v9 = vpop.eup %1724  ;;  %v1026_v28 = vmul.f32 1.442695, %v1023_v7 }
 0xc34   :  { %v902_v12 = vsel %vm167_vm2, %v1725_v9, 0.0 }
 0xc35   :  { %v1727_v15 = vpop.eup %1726  ;;  %1730 = vpow2.f32 %v1026_v28  ;;  %903 = vadd.xlane.f32.xlu1 %v902_v12 }
 0xc36   :  { %v905_v13 = vsel %vm167_vm2, %v1727_v15, 0.0 }
 0xc37   :  { %906 = vadd.xlane.f32.xlu0 %v905_v13 }
 0xc3b   :  { %v1729_v16 = vpop.eup %1728 }
 0xc3c   :  { %v1028_v17 = vsel %vm167_vm2, %v1729_v16, 0.0 }
 0xc3d   :  { %1029 = vadd.xlane.f32.xlu1 %v1028_v17 }
 0xc3f   :  { %v1731_v18 = vpop.eup %1730 }
 0xc40   :  { %v1031_v20 = vsel %vm167_vm2, %v1731_v18, 0.0 }
 0xc41   :  { %1032 = vadd.xlane.f32.xlu0 %v1031_v20 }
 0xc4e   :  { %913 = vrot.lane.b32.xlu1 %v2047_v32, %s1793_s29 }
 0xc57   :  { %1039 = vrot.lane.b32.xlu0 %v2047_v32, %s1792_s28 }
 0xcc2   :  { %v904_v23 = vpop.xlane.xlu1 %903 }
 0xcc3   :  { %1732 = vrcp.f32 %v904_v23  ;;  %v1695_v23 = vld [vmem:[%s2187_s5 + $0x18] sm:$0xff]  }
 0xcc4   :  { %v907_v25 = vpop.xlane.xlu0 %906 }
 0xcc5   :  { %1734 = vrcp.f32 %v907_v25  ;;  %v1696_v25 = vld [vmem:[%s2189_s7 + $0x20] sm:$0xff]  }
 0xcca   :  { %v1030_v26 = vpop.xlane.xlu1 %1029 }
 0xccb   :  { %1736 = vrcp.f32 %v1030_v26  ;;  %v1697_v26 = vld [vmem:[%s2189_s7 + $0x28] sm:$0xff]  }
 0xccd   :  { %v1733_v27 = vpop.eup %1732 }
 0xcce   :  { %v914_v41 = vpop.permute.xlu1 %913  ;;  %v1033_v29 = vpop.xlane.xlu0 %1032  ;;  %v910_v31 = vmul.f32 %v1733_v27, %v1725_v9 }
 0xccf   :  { %v1735_v30 = vpop.eup %1734  ;;  %1738 = vrcp.f32 %v1033_v29  ;;  %1620 = vmatpush3.bf16.msra.mxu0 %v914_v41 }
 0xcd0   :  { %v911_v33 = vmul.f32 %v1735_v30, %v1727_v15  ;;  %1631 = vmatprep.subr.bf16.mxu0 %v1787_v1 }
 0xcd2   :  { %v1040_v34 = vpop.permute.xlu0 %1039  ;;  %v912_v36 = vpack.c.bf16 %v911_v33, %v910_v31 }
 0xcd4   :  { %1622 = vmatmul.mubr.msk.bf16.vlgmr.msra.gmra.mrb[16].mxu0 %vm167_vm2, %v912_v36 }
 0xcd5   :  { %1632 = vmatpush3.bf16.msra.mxu0 %v1040_v34  ;;  %1633 = vmatprep.mubr.msk.bf16.mxu0 %vm1788_vm0, %v1787_v1  ;;  %v1737_v32 = vpop.eup %1736  ;;  %v1224_v34 = vrot.slane %v2111_v59, %v553_v11  ;;  %v1699_v11 = vld [vmem:[%s2189_s7 + $0x38] sm:$0xff]  }
 0xcd6   :  { %1643 = vmatprep.subr.bf16.mxu0 %v1787_v1  ;;  %v1036_v38 = vmul.f32 %v1737_v32, %v1729_v16 }
 0xcd9   :  { %v1739_v37 = vpop.eup %1738 }
 0xcda   :  { %v1037_v39 = vmul.f32 %v1739_v37, %v1731_v18 }
 0xcdc   :  { %v1038_v43 = vpack.c.bf16 %v1037_v39, %v1036_v38 }
 0xcde   :  { %1634 = vmatmul.mubr.msk.bf16.vlgmr.msra.gmra.mrb[20].mxu0 %vm167_vm2, %v1038_v43  ;;  %v1230_v43 = vrot.slane %v2111_v59, %v559_v14  ;;  %v1486_v14 = vld [vmem:[%s2188_s6 + $0x1] ss:$0 sm:$0xff]  ;;  %s1794_s6 = smov [#allocation4]  }
 0xcdf   :  { %1645 = vmatprep.mubr.msk.bf16.mxu0 %vm1788_vm0, %v1787_v1  ;;  %1644 = vmatpush3.bf16.msra.mxu0 %v1692_v44 }
 0xce0   :  { %1657 = vmatprep.subr.bf16.mxu0 %v1787_v1 }
 0xda7   :  { %v953_v19 = vpop.f32.mrb[16].mxu0 }
 0xda8   :  { %v1623_v46 = vpop.f32.mrb[17].mxu0 }
 0xda9   :  { %v956_v47 = vpop.f32.mrb[18].mxu0 }
 0xdaa   :  { %v960_v48 = vpack.c.bf16 %v956_v47, %v953_v19  ;;  %v1624_v49 = vpop.f32.mrb[19].mxu0  ;;  %v1698_v47 = vld [vmem:[%s2189_s7 + $0x30] sm:$0xff]   ;;  %s1418_s7 = sshll.u32 %s1794_s6, 4  ;;  %s1419_s7 = int_to_ptr.vmem [resolvable:$true] %s1418_s7 }
 0xdab   :  { %s1760_s30 = scalar_lea.vmem %s1419_s7, 256  ;;  %p1765_p6 = scmp.lt.s32.totalorder %s1419_s7, %s1419_s7 }
 0xdac   :  { %1646 = vmatmul.mubr.msk.bf16.vlgmr.msra.gmra.mrb[24].mxu0 %vm167_vm2, %v960_v48  ;;  %p1761_p5 = scmp.ne.s32.totalorder %s1419_s7, %s1760_s30  ;;  %p1766_p7 = scmp.lt.s32.totalorder %s1760_s30, %s1760_s30 }
 0xdad   :  { %1665 = vmatprep.mubr.msk.bf16.mxu0 %vm1788_vm0, %v1787_v1  ;;  %1658 = vmatpush3.bf16.msra.mxu0 %v1696_v25 }
 0xdae   :  { %1659 = vmatprep.subr.bf16.mxu0 %v1787_v1  ;;  %p1767_p8 = por %p1766_p7, %p1765_p6 }
 0xdb0   :  { %p1768_p9 = pnand %p1767_p8, %p1761_p5 }
 0xdb1   :  { %v1079_v50 = vpop.f32.mrb[20].mxu0  ;;  %1660 = vmatpush3.bf16.msra.mxu0 %v1697_v26  ;;  %v1408_v26 = vrot.slane %v2111_v59, %v738_v10 }
 0xdb2   :  { %v1635_v51 = vpop.f32.mrb[21].mxu0  ;;  %1661 = vmatprep.subr.bf16.mxu0 %v1787_v1 }
 0xdb3   :  { %v1082_v52 = vpop.f32.mrb[22].mxu0 }
 0xdb4   :  { %v1086_v53 = vpack.c.bf16 %v1082_v52, %v1079_v50  ;;  %v1636_v54 = vpop.f32.mrb[23].mxu0 }
 0xdb5   :  { %1662 = vmatpush3.bf16.msra.mxu0 %v1698_v47 }
 0xdb6   :  { %1640 = vmatmul.mubr.msk.bf16.vlgmr.msra.gmra.mrb[32].mxu1 %vm167_vm2, %v1086_v53  ;;  %1663 = vmatprep.subr.bf16.mxu0 %v1787_v1 }
 0xdb7   :  { %1653 = vmatprep.mubr.msk.bf16.mxu1 %vm1788_vm0, %v1787_v1 }
 0xdb9   :  { %1664 = vmatpush3.bf16.msra.mxu0 %v1699_v11 }
 0xe7f   :  { %v1180_v55 = vpop.f32.mrb[24].mxu0 }
 0xe80   :  { %v1647_v56 = vpop.f32.mrb[25].mxu0 }
 0xe81   :  { %v1183_v57 = vpop.f32.mrb[26].mxu0 }
 0xe82   :  { %v1648_v58 = vpop.f32.mrb[27].mxu0 }
 0xe89   :  { %v1130_v61 = vpop.f32.mrb[32].mxu1 }
 0xe8a   :  { %v1181_v62 = vadd.f32 %v1180_v55, %v1130_v61  ;;  %v1641_v3 = vpop.f32.mrb[33].mxu1 }
 0xe8b   :  { %v1133_v4 = vpop.f32.mrb[34].mxu1 }
 0xe8c   :  { %v1191_v63 = vadd.f32 %v1190_v60, %v1181_v62  ;;  %v1184_v0 = vadd.f32 %v1183_v57, %v1133_v4  ;;  %v1642_v2 = vpop.f32.mrb[35].mxu1 }
 0xe8e   :  { %v1192_v24 = vadd.f32 %v1190_v60, %v1184_v0  ;;  %v1193_v5 = vadd.f32 %v1191_v63, %v2035_v21 }
 0xe90   :  { %v1195_v6 = vsel %vm118_vm1, %v1193_v5, 0.0  ;;  %v1194_v7 = vadd.f32 %v1192_v24, %v2037_v22  ;;  %v1694_v22 = vld [vmem:[%s2187_s5 + $0x10] sm:$0xff]  }
 0xe91   :  { %1196 = vadd.xlane.f32.xlu1 %v1195_v6  ;;  %1650 = vmatpush3.bf16.msra.mxu1 %v1694_v22  ;;  %v1402_v22 = vrot.slane %v2111_v59, %v732_v8 }
 0xe92   :  { %v1198_v9 = vsel %vm118_vm1, %v1194_v7, 0.0  ;;  %1651 = vmatprep.subr.bf16.mxu1 %v1787_v1  ;;  %v1302_v1 = vrot.slane %v2111_v59, %v631_v42 }
 0xe93   :  { %1199 = vadd.xlane.f32.xlu0 %v1198_v9 }
 0xe95   :  { %1652 = vmatpush3.bf16.msra.mxu1 %v1695_v23 }
 0xf1e   :  { %v1197_v28 = vpop.xlane.xlu1 %1196 }
 0xf1f   :  { %v1201_v40 = vmul.f32 0.03125, %v1197_v28 }
 0xf20   :  { %v1200_v12 = vpop.xlane.xlu0 %1199 }
 0xf21   :  { %v1203_v15 = vsub.f32 %v1193_v5, %v1201_v40  ;;  %v1202_v13 = vmul.f32 0.03125, %v1200_v12 }
 0xf23   :  { %v1204_v16 = vsub.f32 %v1194_v7, %v1202_v13  ;;  %v1205_v17 = vmul.f32 %v1203_v15, %v1203_v15 }
 0xf25   :  { %v1207_v18 = vsel %vm118_vm1, %v1205_v17, 0.0  ;;  %v1206_v20 = vmul.f32 %v1204_v16, %v1204_v16 }
 0xf26   :  { %1208 = vadd.xlane.f32.xlu1 %v1207_v18 }
 0xf27   :  { %v1210_v21 = vsel %vm118_vm1, %v1206_v20, 0.0 }
 0xf28   :  { %1211 = vadd.xlane.f32.xlu0 %v1210_v21 }
 0xfb3   :  { %v1209_v27 = vpop.xlane.xlu1 %1208 }
 0xfb4   :  { %v1213_v41 = vmul.f32 0.03125, %v1209_v27 }
 0xfb5   :  { %v1212_v29 = vpop.xlane.xlu0 %1211 }
 0xfb6   :  { %v1215_v30 = vadd.f32 1e-05, %v1213_v41  ;;  %v1214_v31 = vmul.f32 0.03125, %v1212_v29 }
 0xfb8   :  { %1740 = vrsqrt.f32 %v1215_v30  ;;  %v1216_v33 = vadd.f32 1e-05, %v1214_v31 }
 0xfba   :  { %1742 = vrsqrt.f32 %v1216_v33 }
 0xfc2   :  { %v1741_v36 = vpop.eup %1740 }
 0xfc3   :  { %v1219_v32 = vmul.f32 %v1741_v36, %v1203_v15 }
 0xfc4   :  { %v1743_v37 = vpop.eup %1742 }
 0xfc5   :  { %v1225_v38 = vmul.f32 %v1224_v34, %v1219_v32  ;;  %v1220_v39 = vmul.f32 %v1743_v37, %v1204_v16 }
 0xfc7   :  { %v1226_v44 = vmul.f32 %v1224_v34, %v1220_v39  ;;  %v1231_v45 = vadd.f32 %v1230_v43, %v1225_v38 }
 0xfc9   :  { %v1232_v19 = vadd.f32 %v1230_v43, %v1226_v44 }
 0xfcb   :  { %v1233_v46 = vpack.c.bf16 %v1232_v19, %v1231_v45 }
 0xfcd   :  { %1654 = vmatmul.mubr.msk.bf16.vlgmr.msra.gmra.mrb[36].mxu1 %vm118_vm1, %v1233_v46 }
0x10a0   :  { %v1289_v48 = vpop.f32.mrb[36].mxu1 }
0x10a1   :  { %v1290_v49 = vadd.f32 %v1486_v14, %v1289_v48  ;;  %v1655_v50 = vpop.f32.mrb[37].mxu1 }
0x10a2   :  { %v1292_v51 = vpop.f32.mrb[38].mxu1 }
0x10a3   :  { %v1293_v52 = vadd.f32 %v1486_v14, %v1292_v51  ;;  %v1656_v53 = vpop.f32.mrb[39].mxu1  ;;  %v1296_v54 = vmax.f32 %v1290_v49, 0.0 }
0x10a5   :  { %v1297_v55 = vmax.f32 %v1293_v52, 0.0 }
0x10a7   :  { %v1298_v56 = vpack.c.bf16 %v1297_v55, %v1296_v54 }
0x10a9   :  { %1666 = vmatmul.mubr.msk.bf16.vlgmr.msra.gmra.mrb[28].mxu0 %vm657_vm7, %v1298_v56 }
0x117c   :  { %v1364_v57 = vpop.f32.mrb[28].mxu0 }
0x117d   :  { %v1365_v58 = vadd.f32 %v1364_v57, %v1302_v1  ;;  %v1667_v60 = vpop.f32.mrb[29].mxu0 }
0x117e   :  { %v1367_v61 = vpop.f32.mrb[30].mxu0 }
0x117f   :  { %v1368_v62 = vadd.f32 %v1367_v61, %v1302_v1  ;;  %v1668_v3 = vpop.f32.mrb[31].mxu0  ;;  %v1371_v4 = vadd.f32 %v1365_v58, %v1231_v45 }
0x1181   :  { %v1373_v63 = vsel %vm118_vm1, %v1371_v4, 0.0  ;;  %v1372_v0 = vadd.f32 %v1368_v62, %v1232_v19 }
0x1182   :  { %1374 = vadd.xlane.f32.xlu1 %v1373_v63 }
0x1183   :  { %v1376_v2 = vsel %vm118_vm1, %v1372_v0, 0.0 }
0x1184   :  { %1377 = vadd.xlane.f32.xlu0 %v1376_v2 }
0x120f   :  { %v1375_v24 = vpop.xlane.xlu1 %1374 }
0x1210   :  { %v1379_v5 = vmul.f32 0.03125, %v1375_v24 }
0x1211   :  { %v1378_v6 = vpop.xlane.xlu0 %1377 }
0x1212   :  { %v1381_v7 = vsub.f32 %v1371_v4, %v1379_v5  ;;  %v1380_v9 = vmul.f32 0.03125, %v1378_v6 }
0x1214   :  { %v1382_v42 = vsub.f32 %v1372_v0, %v1380_v9  ;;  %v1383_v28 = vmul.f32 %v1381_v7, %v1381_v7 }
0x1216   :  { %v1385_v40 = vsel %vm118_vm1, %v1383_v28, 0.0  ;;  %v1384_v12 = vmul.f32 %v1382_v42, %v1382_v42 }
0x1217   :  { %1386 = vadd.xlane.f32.xlu1 %v1385_v40 }
0x1218   :  { %v1388_v15 = vsel %vm118_vm1, %v1384_v12, 0.0 }
0x1219   :  { %1389 = vadd.xlane.f32.xlu0 %v1388_v15 }
0x12a4   :  { %v1387_v13 = vpop.xlane.xlu1 %1386 }
0x12a5   :  { %v1391_v16 = vmul.f32 0.03125, %v1387_v13 }
0x12a6   :  { %v1390_v17 = vpop.xlane.xlu0 %1389 }
0x12a7   :  { %v1393_v18 = vadd.f32 1e-05, %v1391_v16  ;;  %v1392_v20 = vmul.f32 0.03125, %v1390_v17 }
0x12a9   :  { %1744 = vrsqrt.f32 %v1393_v18  ;;  %v1394_v21 = vadd.f32 1e-05, %v1392_v20 }
0x12ab   :  { %1746 = vrsqrt.f32 %v1394_v21 }
0x12b3   :  { %v1745_v23 = vpop.eup %1744 }
0x12b4   :  { %v1397_v25 = vmul.f32 %v1745_v23, %v1381_v7 }
0x12b5   :  { %v1747_v27 = vpop.eup %1746 }
0x12b6   :  { %v1398_v41 = vmul.f32 %v1747_v27, %v1382_v42  ;;  %v1403_v29 = vmul.f32 %v1402_v22, %v1397_v25 }
0x12b8   :  { %v1404_v30 = vmul.f32 %v1402_v22, %v1398_v41  ;;  %v1409_v31 = vadd.f32 %v1408_v26, %v1403_v29 }
0x12ba   :  { %v1410_v33 = vadd.f32 %v1408_v26, %v1404_v30  ;;  %1411 = vst.msk [vmem:[#allocation4] sm:$0xff] %vm118_vm1, %v1409_v31 }
0x12bc   :  { %1412 = vst.msk [vmem:[#allocation4 + $0x8] sm:$0xff] %vm118_vm1, %v1410_v33 }
0x12bd   :  { %1771 = shalt.err (!%p1768_p9)
}
0x12be   :  { %s1772_s12 = scalar_lea.hbm %s2191_s9, 256 }
0x12bf   :  { %p1773_p10 = scmp.ne.s32.totalorder %s2191_s9, %s1772_s12  ;;  %p1776_p11 = scmp.lt.u32.totalorder %s1772_s12, %s2191_s9 }
0x12c1   :  { %p1778_p12 = pnand %p1776_p11, %p1773_p10 }
0x12c3   :  { %1781 = shalt.err (!%p1778_p12)
}
0x12c4   :  { %s1795_s3 = smov 128   ;;  %s1796_s22 = smov 8  }
0x12c5   :  { %1424 = dma.vmem_to_hbm [thread:$0]  %s1419_s7, 256, %s2191_s9, [#allocation5], %s1795_s3, %s1795_s3, %s1796_s22  }
0x12c6   :  { %1784 = dma.done.wait [#allocation5], 256  }
0x12c7   :  { %1785 = vsyncadd [#allocation5], 4294967040 }
0x12c8   :  { %1428 = vsyncpa [#allocation5], 1 }

</bundles_post_ra>
